<compile_context>
chip_gen: v7x
topology: tpu7x:2x2x1
jax: 0.10.0
libtpu: 0.0.40
codegen_flags: <defaults>
</compile_context>

<pallas_src>
import jax
import jax.numpy as jnp
from jax.experimental import pallas as pl
from jax.experimental.pallas import tpu as pltpu


def autoencoder_kernel(x_ref,
                       w1_ref, b1_ref,
                       w2_ref, b2_ref,
                       w3_ref, b3_ref,
                       w4_ref, b4_ref,
                       w5_ref, b5_ref,
                       w6_ref, b6_ref,
                       out_ref):
    """Fused forward pass for one (TB, input_dim) batch tile."""

    def linear(h, w_ref, b_ref):
        # bf16 MXU operands (weights are already bf16), f32 accumulation;
        # bias-add stays f32.
        y = jnp.dot(h.astype(jnp.bfloat16), w_ref[...],
                    preferred_element_type=jnp.float32)
        return y + b_ref[...]

    h = x_ref[...].astype(jnp.float32)

    # ---- Encoder ----
    h = jnp.maximum(linear(h, w1_ref, b1_ref), 0.0)
    h = jnp.maximum(linear(h, w2_ref, b2_ref), 0.0)
    h = jnp.maximum(linear(h, w3_ref, b3_ref), 0.0)   # bottleneck

    # ---- Decoder ----
    h = jnp.maximum(linear(h, w4_ref, b4_ref), 0.0)
    h = jnp.maximum(linear(h, w5_ref, b5_ref), 0.0)
    h = linear(h, w6_ref, b6_ref)

    # Sigmoid: exp on the EUP, approx reciprocal on the EUP (no VALU divide).
    h = pl.reciprocal(1.0 + jnp.exp(-h), approx=True)

    out_ref[...] = h.astype(out_ref.dtype)


def _choose_tile(batch, block_batch):
    """Pick a batch-tile size (sublane-friendly, v7x-friendly)."""
    if batch <= block_batch:
        # Whole batch would fit in one tile. Split in two (one per v7x TC)
        # whenever each half is still >= 256 rows and a multiple of 8.
        if batch % 16 == 0 and batch // 2 >= 256:
            return batch // 2
        # Single full-extent block (always a legal block shape, even when
        # batch is not a multiple of 8).
        return batch
    # Multi-tile path: multiple of 8 sublanes; ragged last block is masked.
    return max(8, (block_batch // 8) * 8)


def autoencoder_forward(x, params, *, block_batch=1024):
    """x: (batch, input_dim) f32. params: list of (W, b), W=(in,out), b=(1,out)."""
    batch, input_dim = x.shape

    # Pre-cast weights to bf16 once (free at trace time, halves weight DMA,
    # removes per-tile VALU casts); biases stay f32.
    flat = []
    for w, b in params:
        flat.append(w.astype(jnp.bfloat16))
        flat.append(b.astype(jnp.float32))

    tb = _choose_tile(batch, block_batch)
    grid = (pl.cdiv(batch, tb),)

    # Activation tiles pipeline over the batch grid; input_dim=128 keeps the
    # output last-dim lane-dense. No host-side padding: Pallas masks the
    # ragged last block (row-local math, so garbage rows are harmless).
    x_spec = pl.BlockSpec((tb, input_dim), lambda i: (i, 0))
    out_spec = pl.BlockSpec((tb, input_dim), lambda i: (i, 0))
    # Weights/biases: full-extent blocks with a constant index_map -> fetched
    # once and kept VMEM-resident across all batch tiles.
    param_specs = [pl.BlockSpec(p.shape, lambda i: (0, 0)) for p in flat]

    flops = 2 * batch * sum(w.shape[0] * w.shape[1] for w, _ in params)
    bytes_accessed = (2 * batch * input_dim * x.dtype.itemsize
                      + sum(int(p.size) * p.dtype.itemsize for p in flat))
    cost = pl.CostEstimate(flops=flops,
                           transcendentals=batch * input_dim,
                           bytes_accessed=bytes_accessed)

    # TODO(synk): if downstream consumers tolerate bf16, make x/out bf16 at
    # this boundary to halve activation HBM traffic (largest roofline lever).
    out = pl.pallas_call(
        autoencoder_kernel,
        out_shape=jax.ShapeDtypeStruct((batch, input_dim), x.dtype),
        grid=grid,
        in_specs=[x_spec] + param_specs,
        out_specs=out_spec,
        compiler_params=pltpu.CompilerParams(
            dimension_semantics=("parallel",),   # shard batch tiles across v7x TCs
        ),
        cost_estimate=cost,
    )(x, *flat)

    return out


def init_linear(key, fan_in, fan_out, dtype=jnp.float32):
    """Mirror torch.nn.Linear default init: U(-1/sqrt(in), 1/sqrt(in))."""
    kw, kb = jax.random.split(key)
    bound = 1.0 / jnp.sqrt(fan_in)
    w = jax.random.uniform(kw, (fan_in, fan_out), dtype, minval=-bound, maxval=bound)
    b = jax.random.uniform(kb, (1, fan_out), dtype, minval=-bound, maxval=bound)
    return w, b


def reference_forward(x, params):
    """Pure-JAX f32 reference for validation."""
    h = x
    for i, (w, b) in enumerate(params):
        h = h @ w + b
        h = jnp.maximum(h, 0.0) if i < len(params) - 1 else jax.nn.sigmoid(h)
    return h


if __name__ == "__main__":
    # Shapes: input_dim=128, h1=64, h2=32, bottleneck=16, batch=512
    # (-> 2 tiles of 256, one per v7x TensorCore; single pipelined pass on v5e/v6e).
    input_dim, h1, h2, b = 128, 64, 32, 16
    batch = 512

    key = jax.random.PRNGKey(0)
    keys = jax.random.split(key, 7)

    params = [
        init_linear(keys[0], input_dim, h1),  # encoder L1
        init_linear(keys[1], h1, h2),         # encoder L2
        init_linear(keys[2], h2, b),          # encoder L3 (bottleneck)
        init_linear(keys[3], b, h2),          # decoder L1
        init_linear(keys[4], h2, h1),         # decoder L2
        init_linear(keys[5], h1, input_dim),  # decoder L3
    ]

    x = jax.random.uniform(keys[6], (batch, input_dim), jnp.float32)

    out = autoencoder_forward(x, params)
    out = jax.block_until_ready(out)

    ref = reference_forward(x, params)
    assert out.shape == (batch, input_dim)
    # bf16 MXU operands + approx reciprocal vs f32 reference -> relaxed tolerance.
    assert jnp.allclose(out, ref, atol=2e-2, rtol=2e-2), "Pallas output mismatch vs reference"

    print("KERNEL_OK")
</pallas_src>

<mosaic_0001>
module attributes {stable_mosaic.version = 11 : i64} {
  func.func @autoencoder_kernel(%arg0: i32, %arg1: memref<256x128xf32, #tpu.memory_space<vmem>>, %arg2: memref<128x64xbf16, #tpu.memory_space<vmem>>, %arg3: memref<1x64xf32, #tpu.memory_space<vmem>>, %arg4: memref<64x32xbf16, #tpu.memory_space<vmem>>, %arg5: memref<1x32xf32, #tpu.memory_space<vmem>>, %arg6: memref<32x16xbf16, #tpu.memory_space<vmem>>, %arg7: memref<1x16xf32, #tpu.memory_space<vmem>>, %arg8: memref<16x32xbf16, #tpu.memory_space<vmem>>, %arg9: memref<1x32xf32, #tpu.memory_space<vmem>>, %arg10: memref<32x64xbf16, #tpu.memory_space<vmem>>, %arg11: memref<1x64xf32, #tpu.memory_space<vmem>>, %arg12: memref<64x128xbf16, #tpu.memory_space<vmem>>, %arg13: memref<1x128xf32, #tpu.memory_space<vmem>>, %arg14: memref<256x128xf32, #tpu.memory_space<vmem>>) attributes {dimension_semantics = [#tpu.dimension_semantics<parallel>], iteration_bounds = array<i64: 2>, scalar_prefetch = 0 : i64, scratch_operands = 0 : i64, tpu.core_type = #tpu.core_type<tc>, window_params = [{transform_indices = @transform_0, window_bounds = array<i64: 256, 128>}, {pipeline_mode = #tpu.pipeline_mode<synchronous>, transform_indices = @transform_1, window_bounds = array<i64: 128, 64>}, {pipeline_mode = #tpu.pipeline_mode<synchronous>, transform_indices = @transform_2, window_bounds = array<i64: 1, 64>}, {pipeline_mode = #tpu.pipeline_mode<synchronous>, transform_indices = @transform_3, window_bounds = array<i64: 64, 32>}, {pipeline_mode = #tpu.pipeline_mode<synchronous>, transform_indices = @transform_4, window_bounds = array<i64: 1, 32>}, {pipeline_mode = #tpu.pipeline_mode<synchronous>, transform_indices = @transform_5, window_bounds = array<i64: 32, 16>}, {pipeline_mode = #tpu.pipeline_mode<synchronous>, transform_indices = @transform_6, window_bounds = array<i64: 1, 16>}, {pipeline_mode = #tpu.pipeline_mode<synchronous>, transform_indices = @transform_7, window_bounds = array<i64: 16, 32>}, {pipeline_mode = #tpu.pipeline_mode<synchronous>, transform_indices = @transform_8, window_bounds = array<i64: 1, 32>}, {pipeline_mode = #tpu.pipeline_mode<synchronous>, transform_indices = @transform_9, window_bounds = array<i64: 32, 64>}, {pipeline_mode = #tpu.pipeline_mode<synchronous>, transform_indices = @transform_10, window_bounds = array<i64: 1, 64>}, {pipeline_mode = #tpu.pipeline_mode<synchronous>, transform_indices = @transform_11, window_bounds = array<i64: 64, 128>}, {pipeline_mode = #tpu.pipeline_mode<synchronous>, transform_indices = @transform_12, window_bounds = array<i64: 1, 128>}, {transform_indices = @transform_13, window_bounds = array<i64: 256, 128>}]} {
    %c0 = arith.constant 0 : index
    %c0_0 = arith.constant 0 : index
    %0 = vector.load %arg1[%c0, %c0_0] : memref<256x128xf32, #tpu.memory_space<vmem>>, vector<256x128xf32>
    %1 = arith.truncf %0 : vector<256x128xf32> to vector<256x128xbf16>
    %c0_1 = arith.constant 0 : index
    %c0_2 = arith.constant 0 : index
    %2 = vector.load %arg2[%c0_1, %c0_2] : memref<128x64xbf16, #tpu.memory_space<vmem>>, vector<128x64xbf16>
    %cst = arith.constant dense<0.000000e+00> : vector<256x64xf32>
    %3 = tpu.matmul %1, %2, %cst {dimension_numbers = #tpu.dot_dimension_numbers<[1], [0], [0], [1], [0, 0, 1, 1], [], []>} : vector<256x128xbf16>, vector<128x64xbf16>, vector<256x64xf32> -> vector<256x64xf32>
    %c0_3 = arith.constant 0 : index
    %c0_4 = arith.constant 0 : index
    %4 = vector.load %arg3[%c0_3, %c0_4] : memref<1x64xf32, #tpu.memory_space<vmem>>, vector<1x64xf32>
    %5 = vector.broadcast %4 : vector<1x64xf32> to vector<256x64xf32>
    %6 = arith.addf %3, %5 : vector<256x64xf32>
    %cst_5 = arith.constant 0.000000e+00 : f32
    %7 = vector.broadcast %cst_5 : f32 to vector<256x64xf32>
    %8 = arith.maximumf %6, %7 : vector<256x64xf32>
    %9 = arith.truncf %8 : vector<256x64xf32> to vector<256x64xbf16>
    %c0_6 = arith.constant 0 : index
    %c0_7 = arith.constant 0 : index
    %10 = vector.load %arg4[%c0_6, %c0_7] : memref<64x32xbf16, #tpu.memory_space<vmem>>, vector<64x32xbf16>
    %cst_8 = arith.constant dense<0.000000e+00> : vector<256x32xf32>
    %11 = tpu.matmul %9, %10, %cst_8 {dimension_numbers = #tpu.dot_dimension_numbers<[1], [0], [0], [1], [0, 0, 1, 1], [], []>} : vector<256x64xbf16>, vector<64x32xbf16>, vector<256x32xf32> -> vector<256x32xf32>
    %c0_9 = arith.constant 0 : index
    %c0_10 = arith.constant 0 : index
    %12 = vector.load %arg5[%c0_9, %c0_10] : memref<1x32xf32, #tpu.memory_space<vmem>>, vector<1x32xf32>
    %13 = vector.broadcast %12 : vector<1x32xf32> to vector<256x32xf32>
    %14 = arith.addf %11, %13 : vector<256x32xf32>
    %cst_11 = arith.constant 0.000000e+00 : f32
    %15 = vector.broadcast %cst_11 : f32 to vector<256x32xf32>
    %16 = arith.maximumf %14, %15 : vector<256x32xf32>
    %17 = arith.truncf %16 : vector<256x32xf32> to vector<256x32xbf16>
    %c0_12 = arith.constant 0 : index
    %c0_13 = arith.constant 0 : index
    %18 = vector.load %arg6[%c0_12, %c0_13] : memref<32x16xbf16, #tpu.memory_space<vmem>>, vector<32x16xbf16>
    %cst_14 = arith.constant dense<0.000000e+00> : vector<256x16xf32>
    %19 = tpu.matmul %17, %18, %cst_14 {dimension_numbers = #tpu.dot_dimension_numbers<[1], [0], [0], [1], [0, 0, 1, 1], [], []>} : vector<256x32xbf16>, vector<32x16xbf16>, vector<256x16xf32> -> vector<256x16xf32>
    %c0_15 = arith.constant 0 : index
    %c0_16 = arith.constant 0 : index
    %20 = vector.load %arg7[%c0_15, %c0_16] : memref<1x16xf32, #tpu.memory_space<vmem>>, vector<1x16xf32>
    %21 = vector.broadcast %20 : vector<1x16xf32> to vector<256x16xf32>
    %22 = arith.addf %19, %21 : vector<256x16xf32>
    %cst_17 = arith.constant 0.000000e+00 : f32
    %23 = vector.broadcast %cst_17 : f32 to vector<256x16xf32>
    %24 = arith.maximumf %22, %23 : vector<256x16xf32>
    %25 = arith.truncf %24 : vector<256x16xf32> to vector<256x16xbf16>
    %c0_18 = arith.constant 0 : index
    %c0_19 = arith.constant 0 : index
    %26 = vector.load %arg8[%c0_18, %c0_19] : memref<16x32xbf16, #tpu.memory_space<vmem>>, vector<16x32xbf16>
    %cst_20 = arith.constant dense<0.000000e+00> : vector<256x32xf32>
    %27 = tpu.matmul %25, %26, %cst_20 {dimension_numbers = #tpu.dot_dimension_numbers<[1], [0], [0], [1], [0, 0, 1, 1], [], []>} : vector<256x16xbf16>, vector<16x32xbf16>, vector<256x32xf32> -> vector<256x32xf32>
    %c0_21 = arith.constant 0 : index
    %c0_22 = arith.constant 0 : index
    %28 = vector.load %arg9[%c0_21, %c0_22] : memref<1x32xf32, #tpu.memory_space<vmem>>, vector<1x32xf32>
    %29 = vector.broadcast %28 : vector<1x32xf32> to vector<256x32xf32>
    %30 = arith.addf %27, %29 : vector<256x32xf32>
    %cst_23 = arith.constant 0.000000e+00 : f32
    %31 = vector.broadcast %cst_23 : f32 to vector<256x32xf32>
    %32 = arith.maximumf %30, %31 : vector<256x32xf32>
    %33 = arith.truncf %32 : vector<256x32xf32> to vector<256x32xbf16>
    %c0_24 = arith.constant 0 : index
    %c0_25 = arith.constant 0 : index
    %34 = vector.load %arg10[%c0_24, %c0_25] : memref<32x64xbf16, #tpu.memory_space<vmem>>, vector<32x64xbf16>
    %cst_26 = arith.constant dense<0.000000e+00> : vector<256x64xf32>
    %35 = tpu.matmul %33, %34, %cst_26 {dimension_numbers = #tpu.dot_dimension_numbers<[1], [0], [0], [1], [0, 0, 1, 1], [], []>} : vector<256x32xbf16>, vector<32x64xbf16>, vector<256x64xf32> -> vector<256x64xf32>
    %c0_27 = arith.constant 0 : index
    %c0_28 = arith.constant 0 : index
    %36 = vector.load %arg11[%c0_27, %c0_28] : memref<1x64xf32, #tpu.memory_space<vmem>>, vector<1x64xf32>
    %37 = vector.broadcast %36 : vector<1x64xf32> to vector<256x64xf32>
    %38 = arith.addf %35, %37 : vector<256x64xf32>
    %cst_29 = arith.constant 0.000000e+00 : f32
    %39 = vector.broadcast %cst_29 : f32 to vector<256x64xf32>
    %40 = arith.maximumf %38, %39 : vector<256x64xf32>
    %41 = arith.truncf %40 : vector<256x64xf32> to vector<256x64xbf16>
    %c0_30 = arith.constant 0 : index
    %c0_31 = arith.constant 0 : index
    %42 = vector.load %arg12[%c0_30, %c0_31] : memref<64x128xbf16, #tpu.memory_space<vmem>>, vector<64x128xbf16>
    %cst_32 = arith.constant dense<0.000000e+00> : vector<256x128xf32>
    %43 = tpu.matmul %41, %42, %cst_32 {dimension_numbers = #tpu.dot_dimension_numbers<[1], [0], [0], [1], [0, 0, 1, 1], [], []>} : vector<256x64xbf16>, vector<64x128xbf16>, vector<256x128xf32> -> vector<256x128xf32>
    %c0_33 = arith.constant 0 : index
    %c0_34 = arith.constant 0 : index
    %44 = vector.load %arg13[%c0_33, %c0_34] : memref<1x128xf32, #tpu.memory_space<vmem>>, vector<1x128xf32>
    %45 = vector.broadcast %44 : vector<1x128xf32> to vector<256x128xf32>
    %46 = arith.addf %43, %45 : vector<256x128xf32>
    %cst_35 = arith.constant 0.000000e+00 : f32
    %47 = vector.broadcast %cst_35 : f32 to vector<256x128xf32>
    %48 = arith.subf %47, %46 : vector<256x128xf32>
    %49 = math.exp %48 : vector<256x128xf32>
    %cst_36 = arith.constant 1.000000e+00 : f32
    %50 = vector.broadcast %cst_36 : f32 to vector<256x128xf32>
    %51 = arith.addf %50, %49 : vector<256x128xf32>
    %52 = tpu.reciprocal %51 {approx = true} : vector<256x128xf32> -> vector<256x128xf32>
    %c0_37 = arith.constant 0 : index
    %c0_38 = arith.constant 0 : index
    %53 = vector.load %arg14[%c0_37, %c0_38] : memref<256x128xf32, #tpu.memory_space<vmem>>, vector<256x128xf32>
    tpu.vector_store %arg14[%c0_37, %c0_38], %52 {strides = array<i32>} : memref<256x128xf32, #tpu.memory_space<vmem>>, vector<256x128xf32>,
    return
  }
  func.func @transform_0(%arg0: i32) -> (i32, i32) {
    %c0_i32 = arith.constant 0 : i32
    %c0_i32_0 = arith.constant 0 : i32
    return %arg0, %c0_i32 : i32, i32
  }
  func.func @transform_1(%arg0: i32) -> (i32, i32) {
    %c0_i32 = arith.constant 0 : i32
    %c0_i32_0 = arith.constant 0 : i32
    %c0_i32_1 = arith.constant 0 : i32
    return %c0_i32, %c0_i32_0 : i32, i32
  }
  func.func @transform_2(%arg0: i32) -> (i32, i32) {
    %c0_i32 = arith.constant 0 : i32
    %c0_i32_0 = arith.constant 0 : i32
    %c0_i32_1 = arith.constant 0 : i32
    return %c0_i32, %c0_i32_0 : i32, i32
  }
  func.func @transform_3(%arg0: i32) -> (i32, i32) {
    %c0_i32 = arith.constant 0 : i32
    %c0_i32_0 = arith.constant 0 : i32
    %c0_i32_1 = arith.constant 0 : i32
    return %c0_i32, %c0_i32_0 : i32, i32
  }
  func.func @transform_4(%arg0: i32) -> (i32, i32) {
    %c0_i32 = arith.constant 0 : i32
    %c0_i32_0 = arith.constant 0 : i32
    %c0_i32_1 = arith.constant 0 : i32
    return %c0_i32, %c0_i32_0 : i32, i32
  }
  func.func @transform_5(%arg0: i32) -> (i32, i32) {
    %c0_i32 = arith.constant 0 : i32
    %c0_i32_0 = arith.constant 0 : i32
    %c0_i32_1 = arith.constant 0 : i32
    return %c0_i32, %c0_i32_0 : i32, i32
  }
  func.func @transform_6(%arg0: i32) -> (i32, i32) {
    %c0_i32 = arith.constant 0 : i32
    %c0_i32_0 = arith.constant 0 : i32
    %c0_i32_1 = arith.constant 0 : i32
    return %c0_i32, %c0_i32_0 : i32, i32
  }
  func.func @transform_7(%arg0: i32) -> (i32, i32) {
    %c0_i32 = arith.constant 0 : i32
    %c0_i32_0 = arith.constant 0 : i32
    %c0_i32_1 = arith.constant 0 : i32
    return %c0_i32, %c0_i32_0 : i32, i32
  }
  func.func @transform_8(%arg0: i32) -> (i32, i32) {
    %c0_i32 = arith.constant 0 : i32
    %c0_i32_0 = arith.constant 0 : i32
    %c0_i32_1 = arith.constant 0 : i32
    return %c0_i32, %c0_i32_0 : i32, i32
  }
  func.func @transform_9(%arg0: i32) -> (i32, i32) {
    %c0_i32 = arith.constant 0 : i32
    %c0_i32_0 = arith.constant 0 : i32
    %c0_i32_1 = arith.constant 0 : i32
    return %c0_i32, %c0_i32_0 : i32, i32
  }
  func.func @transform_10(%arg0: i32) -> (i32, i32) {
    %c0_i32 = arith.constant 0 : i32
    %c0_i32_0 = arith.constant 0 : i32
    %c0_i32_1 = arith.constant 0 : i32
    return %c0_i32, %c0_i32_0 : i32, i32
  }
  func.func @transform_11(%arg0: i32) -> (i32, i32) {
    %c0_i32 = arith.constant 0 : i32
    %c0_i32_0 = arith.constant 0 : i32
    %c0_i32_1 = arith.constant 0 : i32
    return %c0_i32, %c0_i32_0 : i32, i32
  }
  func.func @transform_12(%arg0: i32) -> (i32, i32) {
    %c0_i32 = arith.constant 0 : i32
    %c0_i32_0 = arith.constant 0 : i32
    %c0_i32_1 = arith.constant 0 : i32
    return %c0_i32, %c0_i32_0 : i32, i32
  }
  func.func @transform_13(%arg0: i32) -> (i32, i32) {
    %c0_i32 = arith.constant 0 : i32
    %c0_i32_0 = arith.constant 0 : i32
    return %arg0, %c0_i32 : i32, i32
  }
}

</mosaic_0001>

<bundles_post_ra>
// kernel: tpu_custom_call.1
= control target key start
LH: loop header
LB: loop body
LE: loop exit
PB: predicated region body
PF: predicated region fallthrough
CT: control target
= control target key end

     0   :  { %18 = vsyncpa [#allocation3], 0  ;;  %s3897_s0 = inlined_call_operand.hbm [shape: f32[512,128], index: 0, kind: input, shape index: {}]   ;;  %s3898_s1 = inlined_call_operand.vmem [shape: bf16[128,64], index: 1, kind: input, shape index: {}]   ;;  %s3899_s2 = inlined_call_operand.vmem [shape: f32[1,64], index: 2, kind: input, shape index: {}]   ;;  %s3900_s3 = inlined_call_operand.vmem [shape: bf16[64,32], index: 3, kind: input, shape index: {}]   ;;  %s3901_s4 = inlined_call_operand.vmem [shape: f32[1,32], index: 4, kind: input, shape index: {}]   ;;  %s3902_s5 = inlined_call_operand.vmem [shape: bf16[32,16], index: 5, kind: input, shape index: {}]   ;;  %s3903_s6 = inlined_call_operand.vmem [shape: f32[1,16], index: 6, kind: input, shape index: {}]   ;;  %s3904_s7 = inlined_call_operand.vmem [shape: bf16[16,32], index: 7, kind: input, shape index: {}]   ;;  %s3905_s8 = inlined_call_operand.vmem [shape: f32[1,32], index: 8, kind: input, shape index: {}]   ;;  %s3906_s9 = inlined_call_operand.vmem [shape: bf16[32,64], index: 9, kind: input, shape index: {}]   ;;  %s3907_s10 = inlined_call_operand.vmem [shape: f32[1,64], index: 10, kind: input, shape index: {}]   ;;  %s3908_s11 = inlined_call_operand.vmem [shape: bf16[64,128], index: 11, kind: input, shape index: {}]   ;;  %s3909_s12 = inlined_call_operand.vmem [shape: f32[1,128], index: 12, kind: input, shape index: {}]   ;;  %s3910_s13 = inlined_call_operand.hbm [shape: f32[512,128], index: 13, kind: output, shape index: {}]  }
   0x1   :  { %20 = vsyncpa [#allocation3 + $0x1], 0 }
   0x2   :  { %21 = vsyncpa [#allocation4], 0 }
   0x3   :  { %23 = vsyncpa [#allocation4 + $0x1], 0  ;;  %s3297_s25 = smov 0   ;;  %s3299_s26 = smov 0  }
   0x4   :  { %s3301_s27 = smov 0   ;;  %s3303_s28 = smov 0  }
   0x5 LB: > { %3916 = sst [smem:[#allocation8_spill]] %s3207_s25  ;;  %s3318_s29 = sadd.s32 4294967295, %s3219_s28   ;;  %s3219_s28 = sphi %s3303_s28, %s3929_s28   ;;  %s3215_s27 = sphi %s3301_s27, %s3931_s27   ;;  %s3211_s26 = sphi %s3299_s26, %s3933_s26   ;;  %s3207_s25 = sphi %s3297_s25, %s3932_s25  }
   0x6   : > { %3917 = sst [smem:[#allocation9_spill]] %s3215_s27  ;;  %s2448_s30 = sadd.s32 4294967294, %s3219_s28  }
   0x7   : > { %s3322_s14 = sadd.s32 1, %s3219_s28   ;;  %s36_s15 = sadd.s32 1, %s3215_s27 }
   0x8   : > { %3918 = sst [smem:[#allocation10_spill]] %s3322_s14  ;;  %s33_s16 = ssub.s32 %s3219_s28, %s3322_s14 }
   0x9   : > { %p43_p0 = scmp.ne.s32.totalorder %s3215_s27, %s3211_s26  ;;  %p34_p1 = scmp.eq.s32.totalorder %s33_s16, 0 }
   0xa   : > { %p44_p2 = scmp.eq.s32.totalorder %s3219_s28, 0  ;;  %p49_p3 = scmp.ne.s32.totalorder %s3211_s26, %s3207_s25 }
   0xb   : > { %p50_p4 = scmp.eq.s32.totalorder %s3318_s29, 0  ;;  %p325_p7 = scmp.eq.s32.totalorder %s3318_s29, 1 }
   0xc   : > { %s3334_s17 = scalar_select %p34_p1, %s3215_s27, %s36_s15  }
   0xd   : > { %p3336_p5 = por %p44_p2, %p43_p0  ;;  %p3340_p6 = por %p50_p4, %p49_p3 }
   0xe   : > { %3919 = sst [smem:[#allocation11_spill]] %s3334_s17  ;;  %p331_p8 = scmp.eq.s32.totalorder %s2448_s30, 1 }
   0xf   : > { %p2936_p10 = scmp.lt.s32.totalorder %s3219_s28, 2  ;;  %p3347_p11 = por %p325_p7, %p43_p0 }
  0x10   : > { %p3351_p12 = por %p331_p8, %p49_p3  ;;  %s387_s22 = sand.u32 1, %s3215_s27  }
  0x11   : > { %s3922_s20 = scalar_select %p3347_p11, 1, 0 }
  0x12   : > { %s3923_s21 = scalar_select %p3351_p12, 1, 0 }
  0x13   : > { %s2569_s23 = sshll.u32 %s3219_s28, 12  ;;  %s2451_s24 = sshll.u32 %s387_s22, 8 }
  0x14   : > { %s3360_s17 = scalar_lea.hbm %s3897_s0, %s2569_s23  ;;  %s391_s30 = scalar_lea.vmem [#allocation2], %s2451_s24 }
  0x15   : > { %s398_s14 = sshll.u32 %s391_s30, 4  ;;  %p3364_p13 = pnand %p2936_p10, %p3336_p5  ;;  %s3368_s14 = int_to_ptr.vmem [resolvable:$true] %s398_s14 }
  0x16   : > { %s3370_s27 = scalar_lea.sflag [#allocation3], %s387_s22  ;;  %s3123_s15 = scalar_lea.hbm %s3360_s17, 4096 }
  0x17   : > { %p3124_p0 = scmp.ne.s32.totalorder %s3360_s17, %s3123_s15  ;;  %p3125_p1 = pneg %p3364_p13 }
  0x18   : > { %s3128_s24 = scalar_lea.hbm %s3897_s0, 8192  ;;  %p3129_p4 = scmp.lt.u32.totalorder %s3360_s17, %s3897_s0 }
  0x19   : > { %p3126_p2 = pnand %p3125_p1, %p3124_p0  ;;  %p3130_p5 = scmp.lt.u32.totalorder %s3128_s24, %s3123_s15 }
  0x1a   : > { %p3132_p8 = scmp.lt.u32.totalorder %s3123_s15, %s3360_s17 }
  0x1b   : > { %p3127_p3 = pneg %p3126_p2  ;;  %p3131_p7 = por %p3130_p5, %p3129_p4 }
  0x1d   : > { %p3133_p10 = por %p3132_p8, %p3131_p7 }
  0x1f   : > { %p3134_p9 = pnand %p3133_p10, %p3127_p3 }
  0x21   : > { %3137 = shalt.err (!%p3134_p9)
}
  0x22   : > { %s3138_s22 = scalar_lea.vmem %s3368_s14, 4096  ;;  %s3221_s23 = smov [#allocation2]  }
  0x23   : > { %p3139_p0 = scmp.ne.s32.totalorder %s3368_s14, %s3138_s22  ;;  %s3143_s18 = sshll.u32 %s3221_s23, 4  ;;  %s3144_s18 = int_to_ptr.vmem [resolvable:$false] %s3143_s18 }
  0x24   : > { %s3145_s16 = scalar_lea.vmem %s3144_s18, 8192  ;;  %p3146_p11 = scmp.lt.s32.totalorder %s3368_s14, %s3144_s18 }
  0x25   : > { %p3141_p2 = pnand %p3139_p0, %p3125_p1  ;;  %p3147_p4 = scmp.lt.s32.totalorder %s3145_s16, %s3138_s22 }
  0x27   : > { %p3142_p12 = pneg %p3141_p2  ;;  %p3148_p5 = por %p3147_p4, %p3146_p11 }
  0x29   : > { %p3149_p7 = pnand %p3148_p5, %p3142_p12 }
  0x2b   : > { %3152 = shalt.err (!%p3149_p7)
}
  0x2c   : > { %s3222_s15 = smov 128   ;;  %s3223_s24 = smov 8  }
  0x2d   : > { %2931 = dma.hbm_to_vmem [thread:$0]  (!%p3364_p13), %s3360_s17, 4096, %s3368_s14, %s3370_s27, %s3222_s15, %s3222_s15, %s3223_s24  }
  0x2e   : > { %p2454_p9 = scmp.ge.s32.totalorder %s3219_s28, 1  ;;  %p406_p1 = scmp.lt.s32.totalorder %s3219_s28, 3 }
  0x30   : > { %p407_p3 = pnand %p2454_p9, %p406_p1 }
  0x31   : > { %s3401_s30 = sand.u32 (!%p407_p3), 1, %s3211_s26  }
  0x32   : > { %410 = sbr.rel (%p407_p3) target bundleno = 1520 (0x5f0), region = 72  ;;  %s2455_s22 = sshll.u32 (!%p407_p3), %s3401_s30, 8 }
  0x33   : > { %s413_s23 = scalar_lea.sflag (!%p407_p3), [#allocation3], %s3401_s30  ;;  %s3407_s18 = scalar_lea.vmem (!%p407_p3), [#allocation2], %s2455_s22 }
  0x39   : > { %3198 = dma.done.wait (%p3340_p6), %s413_s23, 4096  }
  0x3a   : > { %3200 = vsyncadd (%p3340_p6), %s413_s23, 4294963200  ;;  %v2974_v0 = vld [vmem:[%s3898_s1] sm:$0xff]   ;;  %v2975_v1 = vld [vmem:[%s3898_s1 + $0x8] sm:$0xff]   ;;  %vm829_vm0 = vcmask 523264   ;;  %vm1110_vm1 = vcmask 261120   ;;  %vm1383_vm2 = vcmask 130048  }
  0x3b   : > { %2688 = vmatprep.subr.bf16.mxu0 %v2974_v0  ;;  %v2976_v2 = vld [vmem:[%s3898_s1 + $0x10] sm:$0xff]   ;;  %v2977_v3 = vld [vmem:[%s3898_s1 + $0x18] sm:$0xff]   ;;  %v462_v4 = vld [vmem:[%s3407_s18] sm:$0xff]  ;;  %s3796_s19 = scalar_lea.vmem [#allocation5], %s2455_s22  ;;  %s2570_s22 = sshll.u32 %s3318_s29, 12 }
  0x3c   : > { %2689 = vmatpush3.bf16.msra.mxu0 %v2974_v0  ;;  %v463_v5 = vld [vmem:[%s3407_s18 + $0x8] sm:$0xff]  ;;  %v2978_v7 = vld [vmem:[%s3898_s1 + $0x20] sm:$0xff]   ;;  %v2980_v9 = vld [vmem:[%s3898_s1 + $0x30] sm:$0xff]   ;;  %s2375_s24 = sshll.u32 %s3796_s19, 4  ;;  %s3848_s25 = scalar_lea.hbm %s3910_s13, %s2570_s22  ;;  %s3850_s24 = int_to_ptr.vmem [resolvable:$true] %s2375_s24 }
  0x3d   : > { %2690 = vmatprep.subr.bf16.mxu0 %v2975_v1  ;;  %v494_v6 = vpack.c.bf16 %v463_v5, %v462_v4  ;;  %v2979_v8 = vld [vmem:[%s3898_s1 + $0x28] sm:$0xff]   ;;  %v2982_v10 = vld [vmem:[%s3900_s3] sm:$0xff]   ;;  %v2981_v12 = vld [vmem:[%s3898_s1 + $0x38] sm:$0xff]   ;;  %s2362_s29 = scalar_lea.sflag [#allocation4], %s3401_s30  ;;  %s3153_s27 = scalar_lea.vmem %s3850_s24, 4096 }
  0x3e   : > { %v2983_v11 = vld [vmem:[%s3900_s3 + $0x8] sm:$0xff]   ;;  %2736 = vmatprep.subr.bf16.mxu1 %v2982_v10  ;;  %v464_v13 = vld [vmem:[%s3407_s18 + $0x10] sm:$0xff]  ;;  %v465_v14 = vld [vmem:[%s3407_s18 + $0x18] sm:$0xff]  ;;  %p3154_p6 = scmp.ne.s32.totalorder %s3850_s24, %s3153_s27  ;;  %p3925_p11 = scmp.ne.s32.totalorder %s3922_s20, 0 }
  0x3f   : > { %2704 = vmatprep.mubr.bf16.mxu0 %v494_v6  ;;  %2737 = vmatpush3.bf16.msra.mxu1 %v2982_v10  ;;  %v466_v15 = vld [vmem:[%s3407_s18 + $0x20] sm:$0xff]  ;;  %v467_v16 = vld [vmem:[%s3407_s18 + $0x28] sm:$0xff]  ;;  %v495_v17 = vpack.c.bf16 %v465_v14, %v464_v13  ;;  %v468_v19 = vld [vmem:[%s3407_s18 + $0x30] sm:$0xff]  ;;  %s3224_s14 = smov [#allocation5]  }
  0x40   : > { %2691 = vmatpush3.bf16.msra.mxu0 %v2975_v1  ;;  %2738 = vmatprep.subr.bf16.mxu1 %v2983_v11  ;;  %v496_v18 = vpack.c.bf16 %v467_v16, %v466_v15  ;;  %v469_v20 = vld [vmem:[%s3407_s18 + $0x38] sm:$0xff]  ;;  %v470_v21 = vld [vmem:[%s3407_s18 + $0x40] sm:$0xff]  ;;  %v471_v22 = vld [vmem:[%s3407_s18 + $0x48] sm:$0xff]  ;;  %p3155_p12 = pnand %p3154_p6, %p3925_p11  ;;  %s3157_s17 = sshll.u32 %s3224_s14, 4  ;;  %s3158_s17 = int_to_ptr.vmem [resolvable:$false] %s3157_s17 }
  0x41   : > { %2692 = vmatprep.subr.bf16.mxu0 %v2976_v2  ;;  %v497_v23 = vpack.c.bf16 %v469_v20, %v468_v19  ;;  %v498_v24 = vpack.c.bf16 %v471_v22, %v470_v21  ;;  %v472_v25 = vld [vmem:[%s3407_s18 + $0x50] sm:$0xff]  ;;  %v473_v26 = vld [vmem:[%s3407_s18 + $0x58] sm:$0xff]  ;;  %v474_v27 = vld [vmem:[%s3407_s18 + $0x60] sm:$0xff]  ;;  %s3159_s16 = scalar_lea.vmem %s3158_s17, 8192  ;;  %p3160_p8 = scmp.lt.s32.totalorder %s3850_s24, %s3158_s17 }
  0x42   : > { %v475_v28 = vld [vmem:[%s3407_s18 + $0x68] sm:$0xff]  ;;  %v499_v29 = vpack.c.bf16 %v473_v26, %v472_v25  ;;  %v476_v31 = vld [vmem:[%s3407_s18 + $0x70] sm:$0xff]  ;;  %v477_v32 = vld [vmem:[%s3407_s18 + $0x78] sm:$0xff]  ;;  %p3156_p13 = pneg %p3155_p12  ;;  %p3161_p10 = scmp.lt.s32.totalorder %s3159_s16, %s3153_s27 }
  0x43   : > { %2739 = vmatpush3.bf16.msra.mxu1 %v2983_v11  ;;  %v500_v30 = vpack.c.bf16 %v475_v28, %v474_v27  ;;  %v478_v33 = vld [vmem:[%s3407_s18 + $0x80] sm:$0xff]  ;;  %v479_v34 = vld [vmem:[%s3407_s18 + $0x88] sm:$0xff]  ;;  %v501_v35 = vpack.c.bf16 %v477_v32, %v476_v31  ;;  %v480_v37 = vld [vmem:[%s3407_s18 + $0x90] sm:$0xff] }
  0x44   : > { %2693 = vmatpush3.bf16.msra.mxu0 %v2976_v2  ;;  %v502_v36 = vpack.c.bf16 %v479_v34, %v478_v33  ;;  %v481_v38 = vld [vmem:[%s3407_s18 + $0x98] sm:$0xff]  ;;  %v482_v39 = vld [vmem:[%s3407_s18 + $0xa0] sm:$0xff]  ;;  %v483_v40 = vld [vmem:[%s3407_s18 + $0xa8] sm:$0xff]  ;;  %p3162_p0 = por %p3161_p10, %p3160_p8 }
  0x45   : > { %2694 = vmatprep.subr.bf16.mxu0 %v2977_v3  ;;  %v503_v41 = vpack.c.bf16 %v481_v38, %v480_v37  ;;  %v504_v42 = vpack.c.bf16 %v483_v40, %v482_v39  ;;  %v484_v43 = vld [vmem:[%s3407_s18 + $0xb0] sm:$0xff]  ;;  %v485_v44 = vld [vmem:[%s3407_s18 + $0xb8] sm:$0xff]  ;;  %v486_v45 = vld [vmem:[%s3407_s18 + $0xc0] sm:$0xff] }
  0x46   : > { %v487_v46 = vld [vmem:[%s3407_s18 + $0xc8] sm:$0xff]  ;;  %v505_v47 = vpack.c.bf16 %v485_v44, %v484_v43  ;;  %v488_v49 = vld [vmem:[%s3407_s18 + $0xd0] sm:$0xff]  ;;  %v489_v50 = vld [vmem:[%s3407_s18 + $0xd8] sm:$0xff]  ;;  %p3163_p2 = pnand %p3162_p0, %p3156_p13 }
  0x47   : > { %v506_v48 = vpack.c.bf16 %v487_v46, %v486_v45  ;;  %v490_v51 = vld [vmem:[%s3407_s18 + $0xe0] sm:$0xff]  ;;  %v491_v52 = vld [vmem:[%s3407_s18 + $0xe8] sm:$0xff]  ;;  %v507_v53 = vpack.c.bf16 %v489_v50, %v488_v49  ;;  %v492_v55 = vld [vmem:[%s3407_s18 + $0xf0] sm:$0xff] }
  0x48   : > { %2695 = vmatpush3.bf16.msra.mxu0 %v2977_v3  ;;  %v508_v54 = vpack.c.bf16 %v491_v52, %v490_v51  ;;  %v493_v56 = vld [vmem:[%s3407_s18 + $0xf8] sm:$0xff]  ;;  %v2984_v58 = vld [vmem:[%s3900_s3 + $0x10] sm:$0xff]   ;;  %v2986_v60 = vld [vmem:[%s3902_s5] sm:$0xff]  }
  0x49   : > { %2696 = vmatprep.subr.bf16.mxu0 %v2978_v7  ;;  %v509_v57 = vpack.c.bf16 %v493_v56, %v492_v55  ;;  %2740 = vmatprep.subr.bf16.mxu1 %v2984_v58  ;;  %v2985_v59 = vld [vmem:[%s3900_s3 + $0x18] sm:$0xff]   ;;  %v3487_v61 = vld [vmem:[%s3899_s2] ss:$0 sm:$0xff]  ;;  %v2987_v15 = vld [vmem:[%s3902_s5 + $0x8] sm:$0xff]  }
  0x4a   : > { %2741 = vmatpush3.bf16.msra.mxu1 %v2984_v58 }
  0x4b   : > { %2742 = vmatprep.subr.bf16.mxu1 %v2985_v59 }
  0x4c   : > { %2697 = vmatpush3.bf16.msra.mxu0 %v2978_v7 }
  0x4d   : > { %2698 = vmatprep.subr.bf16.mxu0 %v2979_v8 }
  0x4e   : > { %2743 = vmatpush3.bf16.msra.mxu1 %v2985_v59 }
  0x4f   : > { %2776 = vmatprep.subr.bf16.mxu1 %v2986_v60 }
  0x50   : > { %2699 = vmatpush3.bf16.msra.mxu0 %v2979_v8 }
  0x51   : > { %2700 = vmatprep.subr.bf16.mxu0 %v2980_v9 }
  0x54   : > { %2701 = vmatpush3.bf16.msra.mxu0 %v2980_v9 }
  0x55   : > { %2702 = vmatprep.subr.bf16.mxu0 %v2981_v12 }
  0x58   : > { %2703 = vmatpush3.bf16.msra.mxu0 %v2981_v12 }
  0x5b   : > { %2705 = vmatmul.mubr.bf16.vlgmr.msra.gmra.mrb[0].mxu0 %v495_v17 }
  0x5c   : > { %2708 = vmatprep.mubr.bf16.mxu0 %v496_v18 }
  0x63   : > { %2709 = vmatmul.mubr.bf16.gmra.mrb[4].mxu0 %v497_v23 }
  0x64   : > { %2712 = vmatprep.mubr.bf16.mxu0 %v498_v24 }
  0x6b   : > { %2713 = vmatmul.mubr.bf16.gmra.mrb[8].mxu0 %v499_v29 }
  0x6c   : > { %2716 = vmatprep.mubr.bf16.mxu0 %v500_v30 }
  0x73   : > { %2717 = vmatmul.mubr.bf16.gmra.mrb[12].mxu0 %v501_v35 }
  0x74   : > { %2720 = vmatprep.mubr.bf16.mxu0 %v502_v36 }
  0x7b   : > { %2721 = vmatmul.mubr.bf16.gmra.mrb[16].mxu0 %v503_v41 }
  0x7c   : > { %2724 = vmatprep.mubr.bf16.mxu0 %v504_v42 }
  0x83   : > { %2725 = vmatmul.mubr.bf16.gmra.mrb[20].mxu0 %v505_v47 }
  0x84   : > { %2728 = vmatprep.mubr.bf16.mxu0 %v506_v48 }
  0x8b   : > { %2729 = vmatmul.mubr.bf16.gmra.mrb[24].mxu0 %v507_v53 }
  0x8c   : > { %2732 = vmatprep.mubr.bf16.mxu0 %v508_v54 }
  0x93   : > { %2733 = vmatmul.mubr.bf16.gmra.mrb[28].mxu0 %v509_v57 }
 0x12e   : > { %v2706_v62 = vpop.f32.mrb[0].mxu0 }
 0x12f   : > { %v624_v63 = vadd.f32 %v2706_v62, %v3487_v61  ;;  %v615_v0 = vpop.f32.mrb[1].mxu0 }
 0x130   : > { %v616_v1 = vadd.f32 %v3487_v61, %v615_v0  ;;  %v2707_v2 = vpop.f32.mrb[2].mxu0 }
 0x131   : > { %v627_v3 = vadd.f32 %v2707_v2, %v3487_v61  ;;  %v618_v4 = vpop.f32.mrb[3].mxu0  ;;  %v744_v6 = vmax.f32 %v624_v63, 0.0 }
 0x132   : > { %v619_v5 = vadd.f32 %v3487_v61, %v618_v4  ;;  %v742_v8 = vmax.f32 %v616_v1, 0.0 }
 0x133   : > { %v745_v7 = vmax.f32 %v627_v3, 0.0 }
 0x134   : > { %v743_v9 = vmax.f32 %v619_v5, 0.0 }
 0x135   : > { %v775_v10 = vpack.c.bf16 %v745_v7, %v744_v6 }
 0x136   : > { %v2710_v11 = vpop.f32.mrb[4].mxu0  ;;  %v774_v12 = vpack.c.bf16 %v743_v9, %v742_v8 }
 0x137   : > { %v640_v13 = vadd.f32 %v2710_v11, %v3487_v61  ;;  %v631_v14 = vpop.f32.mrb[5].mxu0 }
 0x138   : > { %v632_v16 = vadd.f32 %v3487_v61, %v631_v14  ;;  %v2711_v17 = vpop.f32.mrb[6].mxu0  ;;  %2744 = vmatprep.mubr.msk.bf16.mxu1 %vm829_vm0, %v774_v12 }
 0x139   : > { %v643_v18 = vadd.f32 %v2711_v17, %v3487_v61  ;;  %v634_v19 = vpop.f32.mrb[7].mxu0  ;;  %2745 = vmatmul.mubr.msk.bf16.vlgmr.msra.gmra.mrb[0].mxu1 %vm829_vm0, %v775_v10  ;;  %v748_v21 = vmax.f32 %v640_v13, 0.0 }
 0x13a   : > { %v635_v20 = vadd.f32 %v3487_v61, %v634_v19  ;;  %2777 = vmatpush3.bf16.msra.mxu1 %v2986_v60  ;;  %v746_v23 = vmax.f32 %v632_v16, 0.0 }
 0x13b   : > { %v749_v22 = vmax.f32 %v643_v18, 0.0  ;;  %2778 = vmatprep.subr.bf16.mxu1 %v2987_v15 }
 0x13c   : > { %v747_v24 = vmax.f32 %v635_v20, 0.0 }
 0x13d   : > { %v777_v25 = vpack.c.bf16 %v749_v22, %v748_v21 }
 0x13e   : > { %v776_v26 = vpack.c.bf16 %v747_v24, %v746_v23  ;;  %v2714_v27 = vpop.f32.mrb[8].mxu0  ;;  %2779 = vmatpush3.bf16.msra.mxu1 %v2987_v15 }
 0x13f   : > { %v656_v28 = vadd.f32 %v2714_v27, %v3487_v61  ;;  %v647_v29 = vpop.f32.mrb[9].mxu0 }
 0x140   : > { %v648_v30 = vadd.f32 %v3487_v61, %v647_v29  ;;  %v2715_v31 = vpop.f32.mrb[10].mxu0  ;;  %2748 = vmatprep.mubr.msk.bf16.mxu1 %vm829_vm0, %v776_v26 }
 0x141   : > { %v659_v32 = vadd.f32 %v2715_v31, %v3487_v61  ;;  %v650_v33 = vpop.f32.mrb[11].mxu0  ;;  %2749 = vmatmul.mubr.msk.bf16.gmra.mrb[4].mxu1 %vm829_vm0, %v777_v25  ;;  %v752_v35 = vmax.f32 %v656_v28, 0.0 }
 0x142   : > { %v651_v34 = vadd.f32 %v3487_v61, %v650_v33  ;;  %v750_v37 = vmax.f32 %v648_v30, 0.0 }
 0x143   : > { %v753_v36 = vmax.f32 %v659_v32, 0.0 }
 0x144   : > { %v751_v38 = vmax.f32 %v651_v34, 0.0 }
 0x145   : > { %v779_v39 = vpack.c.bf16 %v753_v36, %v752_v35 }
 0x146   : > { %v778_v40 = vpack.c.bf16 %v751_v38, %v750_v37  ;;  %v2718_v41 = vpop.f32.mrb[12].mxu0 }
 0x147   : > { %v672_v42 = vadd.f32 %v2718_v41, %v3487_v61  ;;  %v663_v43 = vpop.f32.mrb[13].mxu0 }
 0x148   : > { %v664_v44 = vadd.f32 %v3487_v61, %v663_v43  ;;  %v2719_v45 = vpop.f32.mrb[14].mxu0  ;;  %2752 = vmatprep.mubr.msk.bf16.mxu1 %vm829_vm0, %v778_v40 }
 0x149   : > { %v675_v46 = vadd.f32 %v2719_v45, %v3487_v61  ;;  %v666_v47 = vpop.f32.mrb[15].mxu0  ;;  %2753 = vmatmul.mubr.msk.bf16.gmra.mrb[8].mxu1 %vm829_vm0, %v779_v39  ;;  %v756_v49 = vmax.f32 %v672_v42, 0.0 }
 0x14a   : > { %v667_v48 = vadd.f32 %v3487_v61, %v666_v47  ;;  %v754_v51 = vmax.f32 %v664_v44, 0.0 }
 0x14b   : > { %v757_v50 = vmax.f32 %v675_v46, 0.0 }
 0x14c   : > { %v755_v52 = vmax.f32 %v667_v48, 0.0  ;;  %v2988_v48 = vld [vmem:[%s3904_s7] sm:$0xff]  }
 0x14d   : > { %v781_v53 = vpack.c.bf16 %v757_v50, %v756_v49  ;;  %2812 = vmatprep.subr.bf16.mxu0 %v2988_v48  ;;  %2922 = vmatprep.subr.bf16.mxu1 %v2988_v48 }
 0x14e   : > { %v780_v54 = vpack.c.bf16 %v755_v52, %v754_v51  ;;  %v2722_v55 = vpop.f32.mrb[16].mxu0  ;;  %2813 = vmatpush3.bf16.msra.mxu0 %v2988_v48 }
 0x14f   : > { %v688_v56 = vadd.f32 %v2722_v55, %v3487_v61  ;;  %v679_v57 = vpop.f32.mrb[17].mxu0 }
 0x150   : > { %v680_v58 = vadd.f32 %v3487_v61, %v679_v57  ;;  %v2723_v59 = vpop.f32.mrb[18].mxu0  ;;  %2756 = vmatprep.mubr.msk.bf16.mxu1 %vm829_vm0, %v780_v54 }
 0x151   : > { %v691_v60 = vadd.f32 %v2723_v59, %v3487_v61  ;;  %v682_v62 = vpop.f32.mrb[19].mxu0  ;;  %2757 = vmatmul.mubr.msk.bf16.gmra.mrb[12].mxu1 %vm829_vm0, %v781_v53  ;;  %v760_v0 = vmax.f32 %v688_v56, 0.0 }
 0x152   : > { %v683_v63 = vadd.f32 %v3487_v61, %v682_v62  ;;  %v758_v2 = vmax.f32 %v680_v58, 0.0 }
 0x153   : > { %v761_v1 = vmax.f32 %v691_v60, 0.0 }
 0x154   : > { %v759_v3 = vmax.f32 %v683_v63, 0.0 }
 0x155   : > { %v783_v4 = vpack.c.bf16 %v761_v1, %v760_v0 }
 0x156   : > { %v782_v5 = vpack.c.bf16 %v759_v3, %v758_v2  ;;  %v2726_v6 = vpop.f32.mrb[20].mxu0 }
 0x157   : > { %v704_v7 = vadd.f32 %v2726_v6, %v3487_v61  ;;  %v695_v8 = vpop.f32.mrb[21].mxu0 }
 0x158   : > { %v696_v9 = vadd.f32 %v3487_v61, %v695_v8  ;;  %v2727_v10 = vpop.f32.mrb[22].mxu0  ;;  %2760 = vmatprep.mubr.msk.bf16.mxu1 %vm829_vm0, %v782_v5 }
 0x159   : > { %v707_v11 = vadd.f32 %v2727_v10, %v3487_v61  ;;  %v698_v12 = vpop.f32.mrb[23].mxu0  ;;  %2761 = vmatmul.mubr.msk.bf16.gmra.mrb[16].mxu1 %vm829_vm0, %v783_v4  ;;  %v764_v14 = vmax.f32 %v704_v7, 0.0 }
 0x15a   : > { %v699_v13 = vadd.f32 %v3487_v61, %v698_v12  ;;  %v762_v16 = vmax.f32 %v696_v9, 0.0 }
 0x15b   : > { %v765_v15 = vmax.f32 %v707_v11, 0.0 }
 0x15c   : > { %v763_v17 = vmax.f32 %v699_v13, 0.0 }
 0x15d   : > { %v785_v18 = vpack.c.bf16 %v765_v15, %v764_v14 }
 0x15e   : > { %v784_v19 = vpack.c.bf16 %v763_v17, %v762_v16  ;;  %v2730_v20 = vpop.f32.mrb[24].mxu0 }
 0x15f   : > { %v720_v21 = vadd.f32 %v2730_v20, %v3487_v61  ;;  %v711_v22 = vpop.f32.mrb[25].mxu0 }
 0x160   : > { %v712_v23 = vadd.f32 %v3487_v61, %v711_v22  ;;  %v2731_v24 = vpop.f32.mrb[26].mxu0  ;;  %2764 = vmatprep.mubr.msk.bf16.mxu1 %vm829_vm0, %v784_v19 }
 0x161   : > { %v723_v25 = vadd.f32 %v2731_v24, %v3487_v61  ;;  %v714_v26 = vpop.f32.mrb[27].mxu0  ;;  %2765 = vmatmul.mubr.msk.bf16.gmra.mrb[20].mxu1 %vm829_vm0, %v785_v18  ;;  %v768_v28 = vmax.f32 %v720_v21, 0.0 }
 0x162   : > { %v715_v27 = vadd.f32 %v3487_v61, %v714_v26  ;;  %v766_v30 = vmax.f32 %v712_v23, 0.0 }
 0x163   : > { %v769_v29 = vmax.f32 %v723_v25, 0.0 }
 0x164   : > { %v767_v31 = vmax.f32 %v715_v27, 0.0 }
 0x165   : > { %v787_v32 = vpack.c.bf16 %v769_v29, %v768_v28 }
 0x166   : > { %v786_v33 = vpack.c.bf16 %v767_v31, %v766_v30  ;;  %v2734_v34 = vpop.f32.mrb[28].mxu0 }
 0x167   : > { %v736_v35 = vadd.f32 %v2734_v34, %v3487_v61  ;;  %v727_v36 = vpop.f32.mrb[29].mxu0 }
 0x168   : > { %v728_v37 = vadd.f32 %v3487_v61, %v727_v36  ;;  %v2735_v38 = vpop.f32.mrb[30].mxu0  ;;  %2768 = vmatprep.mubr.msk.bf16.mxu1 %vm829_vm0, %v786_v33 }
 0x169   : > { %v739_v39 = vadd.f32 %v2735_v38, %v3487_v61  ;;  %v730_v40 = vpop.f32.mrb[31].mxu0  ;;  %2769 = vmatmul.mubr.msk.bf16.gmra.mrb[24].mxu1 %vm829_vm0, %v787_v32  ;;  %v772_v42 = vmax.f32 %v736_v35, 0.0 }
 0x16a   : > { %v731_v41 = vadd.f32 %v3487_v61, %v730_v40  ;;  %v770_v44 = vmax.f32 %v728_v37, 0.0  ;;  %v3546_v61 = vld [vmem:[%s3901_s4] ss:$0 sm:$0xff] }
 0x16b   : > { %v773_v43 = vmax.f32 %v739_v39, 0.0 }
 0x16c   : > { %v771_v45 = vmax.f32 %v731_v41, 0.0 }
 0x16d   : > { %v789_v46 = vpack.c.bf16 %v773_v43, %v772_v42 }
 0x16e   : > { %v788_v47 = vpack.c.bf16 %v771_v45, %v770_v44 }
 0x170   : > { %2772 = vmatprep.mubr.msk.bf16.mxu1 %vm829_vm0, %v788_v47 }
 0x171   : > { %2773 = vmatmul.mubr.msk.bf16.gmra.mrb[28].mxu1 %vm829_vm0, %v789_v46 }
 0x20c   : > { %v2746_v49 = vpop.f32.mrb[0].mxu1 }
 0x20d   : > { %v921_v50 = vadd.f32 %v2746_v49, %v3546_v61  ;;  %v912_v51 = vpop.f32.mrb[1].mxu1 }
 0x20e   : > { %v913_v52 = vadd.f32 %v3546_v61, %v912_v51  ;;  %v2747_v53 = vpop.f32.mrb[2].mxu1 }
 0x20f   : > { %v924_v54 = vadd.f32 %v2747_v53, %v3546_v61  ;;  %v915_v55 = vpop.f32.mrb[3].mxu1  ;;  %v1041_v57 = vmax.f32 %v921_v50, 0.0 }
 0x210   : > { %v916_v56 = vadd.f32 %v3546_v61, %v915_v55  ;;  %v1039_v59 = vmax.f32 %v913_v52, 0.0 }
 0x211   : > { %v1042_v58 = vmax.f32 %v924_v54, 0.0 }
 0x212   : > { %v1040_v60 = vmax.f32 %v916_v56, 0.0 }
 0x213   : > { %v1072_v62 = vpack.c.bf16 %v1042_v58, %v1041_v57 }
 0x214   : > { %v1071_v63 = vpack.c.bf16 %v1040_v60, %v1039_v59  ;;  %v2750_v0 = vpop.f32.mrb[4].mxu1 }
 0x215   : > { %v937_v1 = vadd.f32 %v2750_v0, %v3546_v61  ;;  %v928_v2 = vpop.f32.mrb[5].mxu1 }
 0x216   : > { %v929_v3 = vadd.f32 %v3546_v61, %v928_v2  ;;  %v2751_v4 = vpop.f32.mrb[6].mxu1  ;;  %2780 = vmatprep.mubr.msk.bf16.mxu1 %vm1110_vm1, %v1071_v63 }
 0x217   : > { %v940_v5 = vadd.f32 %v2751_v4, %v3546_v61  ;;  %v931_v6 = vpop.f32.mrb[7].mxu1  ;;  %2781 = vmatmul.mubr.msk.bf16.vlgmr.msra.gmra.mrb[32].mxu1 %vm1110_vm1, %v1072_v62  ;;  %v1045_v8 = vmax.f32 %v937_v1, 0.0 }
 0x218   : > { %v932_v7 = vadd.f32 %v3546_v61, %v931_v6  ;;  %2923 = vmatpush3.bf16.msra.mxu1 %v2988_v48  ;;  %v1043_v10 = vmax.f32 %v929_v3, 0.0 }
 0x219   : > { %v1046_v9 = vmax.f32 %v940_v5, 0.0 }
 0x21a   : > { %v1044_v11 = vmax.f32 %v932_v7, 0.0 }
 0x21b   : > { %v1074_v12 = vpack.c.bf16 %v1046_v9, %v1045_v8 }
 0x21c   : > { %v1073_v13 = vpack.c.bf16 %v1044_v11, %v1043_v10  ;;  %v2754_v14 = vpop.f32.mrb[8].mxu1 }
 0x21d   : > { %v953_v15 = vadd.f32 %v2754_v14, %v3546_v61  ;;  %v944_v16 = vpop.f32.mrb[9].mxu1 }
 0x21e   : > { %v945_v17 = vadd.f32 %v3546_v61, %v944_v16  ;;  %v2755_v18 = vpop.f32.mrb[10].mxu1  ;;  %2784 = vmatprep.mubr.msk.bf16.mxu1 %vm1110_vm1, %v1073_v13 }
 0x21f   : > { %v956_v19 = vadd.f32 %v2755_v18, %v3546_v61  ;;  %v947_v20 = vpop.f32.mrb[11].mxu1  ;;  %2785 = vmatmul.mubr.msk.bf16.gmra.mrb[36].mxu1 %vm1110_vm1, %v1074_v12  ;;  %v1049_v22 = vmax.f32 %v953_v15, 0.0 }
 0x220   : > { %v948_v21 = vadd.f32 %v3546_v61, %v947_v20  ;;  %v1047_v24 = vmax.f32 %v945_v17, 0.0 }
 0x221   : > { %v1050_v23 = vmax.f32 %v956_v19, 0.0 }
 0x222   : > { %v1048_v25 = vmax.f32 %v948_v21, 0.0 }
 0x223   : > { %v1076_v26 = vpack.c.bf16 %v1050_v23, %v1049_v22 }
 0x224   : > { %v1075_v27 = vpack.c.bf16 %v1048_v25, %v1047_v24  ;;  %v2758_v28 = vpop.f32.mrb[12].mxu1 }
 0x225   : > { %v969_v29 = vadd.f32 %v2758_v28, %v3546_v61  ;;  %v960_v30 = vpop.f32.mrb[13].mxu1 }
 0x226   : > { %v961_v31 = vadd.f32 %v3546_v61, %v960_v30  ;;  %v2759_v32 = vpop.f32.mrb[14].mxu1  ;;  %2788 = vmatprep.mubr.msk.bf16.mxu1 %vm1110_vm1, %v1075_v27 }
 0x227   : > { %v972_v33 = vadd.f32 %v2759_v32, %v3546_v61  ;;  %v963_v34 = vpop.f32.mrb[15].mxu1  ;;  %2789 = vmatmul.mubr.msk.bf16.gmra.mrb[40].mxu1 %vm1110_vm1, %v1076_v26  ;;  %v1053_v36 = vmax.f32 %v969_v29, 0.0 }
 0x228   : > { %v964_v35 = vadd.f32 %v3546_v61, %v963_v34  ;;  %v1051_v38 = vmax.f32 %v961_v31, 0.0 }
 0x229   : > { %v1054_v37 = vmax.f32 %v972_v33, 0.0 }
 0x22a   : > { %v1052_v39 = vmax.f32 %v964_v35, 0.0  ;;  %v3599_v35 = vld [vmem:[%s3903_s6] ss:$0 sm:$0xff] }
 0x22b   : > { %v1078_v40 = vpack.c.bf16 %v1054_v37, %v1053_v36 }
 0x22c   : > { %v1077_v41 = vpack.c.bf16 %v1052_v39, %v1051_v38  ;;  %v2762_v42 = vpop.f32.mrb[16].mxu1 }
 0x22d   : > { %v985_v43 = vadd.f32 %v2762_v42, %v3546_v61  ;;  %v976_v44 = vpop.f32.mrb[17].mxu1 }
 0x22e   : > { %v977_v45 = vadd.f32 %v3546_v61, %v976_v44  ;;  %v2763_v46 = vpop.f32.mrb[18].mxu1  ;;  %2792 = vmatprep.mubr.msk.bf16.mxu1 %vm1110_vm1, %v1077_v41 }
 0x22f   : > { %v988_v47 = vadd.f32 %v2763_v46, %v3546_v61  ;;  %v979_v48 = vpop.f32.mrb[19].mxu1  ;;  %2793 = vmatmul.mubr.msk.bf16.gmra.mrb[44].mxu1 %vm1110_vm1, %v1078_v40  ;;  %v1057_v50 = vmax.f32 %v985_v43, 0.0 }
 0x230   : > { %v980_v49 = vadd.f32 %v3546_v61, %v979_v48  ;;  %v1055_v52 = vmax.f32 %v977_v45, 0.0 }
 0x231   : > { %v1058_v51 = vmax.f32 %v988_v47, 0.0 }
 0x232   : > { %v1056_v53 = vmax.f32 %v980_v49, 0.0 }
 0x233   : > { %v1080_v54 = vpack.c.bf16 %v1058_v51, %v1057_v50 }
 0x234   : > { %v1079_v55 = vpack.c.bf16 %v1056_v53, %v1055_v52  ;;  %v2766_v56 = vpop.f32.mrb[20].mxu1 }
 0x235   : > { %v1001_v57 = vadd.f32 %v2766_v56, %v3546_v61  ;;  %v992_v58 = vpop.f32.mrb[21].mxu1 }
 0x236   : > { %v993_v59 = vadd.f32 %v3546_v61, %v992_v58  ;;  %v2767_v60 = vpop.f32.mrb[22].mxu1  ;;  %2796 = vmatprep.mubr.msk.bf16.mxu1 %vm1110_vm1, %v1079_v55 }
 0x237   : > { %v1004_v62 = vadd.f32 %v2767_v60, %v3546_v61  ;;  %v995_v63 = vpop.f32.mrb[23].mxu1  ;;  %2797 = vmatmul.mubr.msk.bf16.gmra.mrb[48].mxu1 %vm1110_vm1, %v1080_v54  ;;  %v1061_v1 = vmax.f32 %v1001_v57, 0.0 }
 0x238   : > { %v996_v0 = vadd.f32 %v3546_v61, %v995_v63  ;;  %v1059_v3 = vmax.f32 %v993_v59, 0.0 }
 0x239   : > { %v1062_v2 = vmax.f32 %v1004_v62, 0.0 }
 0x23a   : > { %v1060_v4 = vmax.f32 %v996_v0, 0.0 }
 0x23b   : > { %v1082_v5 = vpack.c.bf16 %v1062_v2, %v1061_v1 }
 0x23c   : > { %v1081_v6 = vpack.c.bf16 %v1060_v4, %v1059_v3  ;;  %v2770_v7 = vpop.f32.mrb[24].mxu1 }
 0x23d   : > { %v1017_v8 = vadd.f32 %v2770_v7, %v3546_v61  ;;  %v1008_v9 = vpop.f32.mrb[25].mxu1 }
 0x23e   : > { %v1009_v10 = vadd.f32 %v3546_v61, %v1008_v9  ;;  %v2771_v11 = vpop.f32.mrb[26].mxu1  ;;  %2800 = vmatprep.mubr.msk.bf16.mxu1 %vm1110_vm1, %v1081_v6 }
 0x23f   : > { %v1020_v12 = vadd.f32 %v2771_v11, %v3546_v61  ;;  %v1011_v13 = vpop.f32.mrb[27].mxu1  ;;  %2801 = vmatmul.mubr.msk.bf16.gmra.mrb[52].mxu1 %vm1110_vm1, %v1082_v5  ;;  %v1065_v15 = vmax.f32 %v1017_v8, 0.0 }
 0x240   : > { %v1012_v14 = vadd.f32 %v3546_v61, %v1011_v13  ;;  %v1063_v17 = vmax.f32 %v1009_v10, 0.0 }
 0x241   : > { %v1066_v16 = vmax.f32 %v1020_v12, 0.0 }
 0x242   : > { %v1064_v18 = vmax.f32 %v1012_v14, 0.0 }
 0x243   : > { %v1084_v19 = vpack.c.bf16 %v1066_v16, %v1065_v15 }
 0x244   : > { %v1083_v20 = vpack.c.bf16 %v1064_v18, %v1063_v17  ;;  %v2774_v21 = vpop.f32.mrb[28].mxu1 }
 0x245   : > { %v1033_v22 = vadd.f32 %v2774_v21, %v3546_v61  ;;  %v1024_v23 = vpop.f32.mrb[29].mxu1 }
 0x246   : > { %v1025_v24 = vadd.f32 %v3546_v61, %v1024_v23  ;;  %v2775_v25 = vpop.f32.mrb[30].mxu1  ;;  %2804 = vmatprep.mubr.msk.bf16.mxu1 %vm1110_vm1, %v1083_v20 }
 0x247   : > { %v1036_v26 = vadd.f32 %v2775_v25, %v3546_v61  ;;  %v1027_v27 = vpop.f32.mrb[31].mxu1  ;;  %2805 = vmatmul.mubr.msk.bf16.gmra.mrb[56].mxu1 %vm1110_vm1, %v1084_v19  ;;  %v1069_v29 = vmax.f32 %v1033_v22, 0.0 }
 0x248   : > { %v1028_v28 = vadd.f32 %v3546_v61, %v1027_v27  ;;  %v1067_v31 = vmax.f32 %v1025_v24, 0.0 }
 0x249   : > { %v1070_v30 = vmax.f32 %v1036_v26, 0.0 }
 0x24a   : > { %v1068_v32 = vmax.f32 %v1028_v28, 0.0 }
 0x24b   : > { %v1086_v33 = vpack.c.bf16 %v1070_v30, %v1069_v29 }
 0x24c   : > { %v1085_v34 = vpack.c.bf16 %v1068_v32, %v1067_v31 }
 0x24e   : > { %2808 = vmatprep.mubr.msk.bf16.mxu1 %vm1110_vm1, %v1085_v34 }
 0x24f   : > { %2809 = vmatmul.mubr.msk.bf16.gmra.mrb[60].mxu1 %vm1110_vm1, %v1086_v33 }
 0x2ea   : > { %v2782_v36 = vpop.f32.mrb[32].mxu1 }
 0x2eb   : > { %v1202_v37 = vadd.f32 %v2782_v36, %v3599_v35  ;;  %v1193_v38 = vpop.f32.mrb[33].mxu1 }
 0x2ec   : > { %v1194_v61 = vadd.f32 %v3599_v35, %v1193_v38  ;;  %v2783_v39 = vpop.f32.mrb[34].mxu1 }
 0x2ed   : > { %v1205_v40 = vadd.f32 %v2783_v39, %v3599_v35  ;;  %v1196_v41 = vpop.f32.mrb[35].mxu1  ;;  %v1322_v43 = vmax.f32 %v1202_v37, 0.0 }
 0x2ee   : > { %v1197_v42 = vadd.f32 %v3599_v35, %v1196_v41  ;;  %v1320_v45 = vmax.f32 %v1194_v61, 0.0 }
 0x2ef   : > { %v1323_v44 = vmax.f32 %v1205_v40, 0.0 }
 0x2f0   : > { %v1321_v46 = vmax.f32 %v1197_v42, 0.0 }
 0x2f1   : > { %v1353_v47 = vpack.c.bf16 %v1323_v44, %v1322_v43 }
 0x2f2   : > { %v1352_v48 = vpack.c.bf16 %v1321_v46, %v1320_v45  ;;  %v2786_v49 = vpop.f32.mrb[36].mxu1 }
 0x2f3   : > { %v1218_v50 = vadd.f32 %v2786_v49, %v3599_v35  ;;  %v1209_v51 = vpop.f32.mrb[37].mxu1 }
 0x2f4   : > { %v1210_v52 = vadd.f32 %v3599_v35, %v1209_v51  ;;  %v2787_v53 = vpop.f32.mrb[38].mxu1  ;;  %2814 = vmatprep.mubr.msk.bf16.mxu0 %vm1383_vm2, %v1352_v48 }
 0x2f5   : > { %v1221_v54 = vadd.f32 %v2787_v53, %v3599_v35  ;;  %v1212_v55 = vpop.f32.mrb[39].mxu1  ;;  %2815 = vmatmul.mubr.msk.bf16.vlgmr.msra.gmra.mrb[32].mxu0 %vm1383_vm2, %v1353_v47  ;;  %v1326_v57 = vmax.f32 %v1218_v50, 0.0 }
 0x2f6   : > { %v1213_v56 = vadd.f32 %v3599_v35, %v1212_v55  ;;  %v1324_v59 = vmax.f32 %v1210_v52, 0.0 }
 0x2f7   : > { %v1327_v58 = vmax.f32 %v1221_v54, 0.0 }
 0x2f8   : > { %v1325_v60 = vmax.f32 %v1213_v56, 0.0 }
 0x2f9   : > { %v1355_v62 = vpack.c.bf16 %v1327_v58, %v1326_v57 }
 0x2fa   : > { %v1354_v63 = vpack.c.bf16 %v1325_v60, %v1324_v59  ;;  %v2790_v0 = vpop.f32.mrb[40].mxu1 }
 0x2fb   : > { %v1234_v1 = vadd.f32 %v2790_v0, %v3599_v35  ;;  %v1225_v2 = vpop.f32.mrb[41].mxu1 }
 0x2fc   : > { %v1226_v3 = vadd.f32 %v3599_v35, %v1225_v2  ;;  %v2791_v4 = vpop.f32.mrb[42].mxu1  ;;  %2818 = vmatprep.mubr.msk.bf16.mxu0 %vm1383_vm2, %v1354_v63 }
 0x2fd   : > { %v1237_v5 = vadd.f32 %v2791_v4, %v3599_v35  ;;  %v1228_v6 = vpop.f32.mrb[43].mxu1  ;;  %2819 = vmatmul.mubr.msk.bf16.gmra.mrb[36].mxu0 %vm1383_vm2, %v1355_v62  ;;  %v1330_v8 = vmax.f32 %v1234_v1, 0.0 }
 0x2fe   : > { %v1229_v7 = vadd.f32 %v3599_v35, %v1228_v6  ;;  %v1328_v10 = vmax.f32 %v1226_v3, 0.0 }
 0x2ff   : > { %v1331_v9 = vmax.f32 %v1237_v5, 0.0 }
 0x300   : > { %v1329_v11 = vmax.f32 %v1229_v7, 0.0 }
 0x301   : > { %v1357_v12 = vpack.c.bf16 %v1331_v9, %v1330_v8 }
 0x302   : > { %v1356_v13 = vpack.c.bf16 %v1329_v11, %v1328_v10  ;;  %v2794_v14 = vpop.f32.mrb[44].mxu1 }
 0x303   : > { %v1250_v15 = vadd.f32 %v2794_v14, %v3599_v35  ;;  %v1241_v16 = vpop.f32.mrb[45].mxu1 }
 0x304   : > { %v1242_v17 = vadd.f32 %v3599_v35, %v1241_v16  ;;  %v2795_v18 = vpop.f32.mrb[46].mxu1  ;;  %2822 = vmatprep.mubr.msk.bf16.mxu0 %vm1383_vm2, %v1356_v13 }
 0x305   : > { %v1253_v19 = vadd.f32 %v2795_v18, %v3599_v35  ;;  %v1244_v20 = vpop.f32.mrb[47].mxu1  ;;  %2823 = vmatmul.mubr.msk.bf16.gmra.mrb[40].mxu0 %vm1383_vm2, %v1357_v12  ;;  %v1334_v22 = vmax.f32 %v1250_v15, 0.0 }
 0x306   : > { %v1245_v21 = vadd.f32 %v3599_v35, %v1244_v20  ;;  %v1332_v24 = vmax.f32 %v1242_v17, 0.0 }
 0x307   : > { %v1335_v23 = vmax.f32 %v1253_v19, 0.0 }
 0x308   : > { %v1333_v25 = vmax.f32 %v1245_v21, 0.0  ;;  %v2989_v21 = vld [vmem:[%s3906_s9] sm:$0xff]  }
 0x309   : > { %v1359_v26 = vpack.c.bf16 %v1335_v23, %v1334_v22  ;;  %2846 = vmatprep.subr.bf16.mxu1 %v2989_v21  ;;  %v2991_v22 = vld [vmem:[%s3908_s11] sm:$0xff]   ;;  %v2992_v23 = vld [vmem:[%s3908_s11 + $0x8] sm:$0xff]  }
 0x30a   : > { %v1358_v27 = vpack.c.bf16 %v1333_v25, %v1332_v24  ;;  %v2798_v28 = vpop.f32.mrb[48].mxu1  ;;  %2882 = vmatprep.subr.bf16.mxu0 %v2991_v22  ;;  %v2993_v24 = vld [vmem:[%s3908_s11 + $0x10] sm:$0xff]   ;;  %v2994_v25 = vld [vmem:[%s3908_s11 + $0x18] sm:$0xff]  }
 0x30b   : > { %v1266_v29 = vadd.f32 %v2798_v28, %v3599_v35  ;;  %v1257_v30 = vpop.f32.mrb[49].mxu1  ;;  %2883 = vmatpush3.bf16.msra.mxu0 %v2991_v22 }
 0x30c   : > { %v1258_v31 = vadd.f32 %v3599_v35, %v1257_v30  ;;  %v2799_v32 = vpop.f32.mrb[50].mxu1  ;;  %2826 = vmatprep.mubr.msk.bf16.mxu0 %vm1383_vm2, %v1358_v27  ;;  %2884 = vmatprep.subr.bf16.mxu0 %v2992_v23 }
 0x30d   : > { %v1269_v33 = vadd.f32 %v2799_v32, %v3599_v35  ;;  %v1260_v34 = vpop.f32.mrb[51].mxu1  ;;  %2827 = vmatmul.mubr.msk.bf16.gmra.mrb[44].mxu0 %vm1383_vm2, %v1359_v26  ;;  %v1338_v37 = vmax.f32 %v1266_v29, 0.0  ;;  %v3670_v26 = vld [vmem:[%s3905_s8] ss:$0 sm:$0xff] }
 0x30e   : > { %v1261_v36 = vadd.f32 %v3599_v35, %v1260_v34  ;;  %v1336_v61 = vmax.f32 %v1258_v31, 0.0 }
 0x30f   : > { %v1339_v38 = vmax.f32 %v1269_v33, 0.0  ;;  %2885 = vmatpush3.bf16.msra.mxu0 %v2992_v23 }
 0x310   : > { %v1337_v39 = vmax.f32 %v1261_v36, 0.0  ;;  %2886 = vmatprep.subr.bf16.mxu0 %v2993_v24 }
 0x311   : > { %v1361_v40 = vpack.c.bf16 %v1339_v38, %v1338_v37 }
 0x312   : > { %v1360_v41 = vpack.c.bf16 %v1337_v39, %v1336_v61  ;;  %v2802_v42 = vpop.f32.mrb[52].mxu1 }
 0x313   : > { %v1282_v43 = vadd.f32 %v2802_v42, %v3599_v35  ;;  %v1273_v44 = vpop.f32.mrb[53].mxu1  ;;  %2887 = vmatpush3.bf16.msra.mxu0 %v2993_v24 }
 0x314   : > { %v1274_v45 = vadd.f32 %v3599_v35, %v1273_v44  ;;  %v2803_v46 = vpop.f32.mrb[54].mxu1  ;;  %2830 = vmatprep.mubr.msk.bf16.mxu0 %vm1383_vm2, %v1360_v41  ;;  %2888 = vmatprep.subr.bf16.mxu0 %v2994_v25 }
 0x315   : > { %v1285_v47 = vadd.f32 %v2803_v46, %v3599_v35  ;;  %v1276_v48 = vpop.f32.mrb[55].mxu1  ;;  %2831 = vmatmul.mubr.msk.bf16.gmra.mrb[48].mxu0 %vm1383_vm2, %v1361_v40  ;;  %v1342_v50 = vmax.f32 %v1282_v43, 0.0 }
 0x316   : > { %v1277_v49 = vadd.f32 %v3599_v35, %v1276_v48  ;;  %v1340_v52 = vmax.f32 %v1274_v45, 0.0 }
 0x317   : > { %v1343_v51 = vmax.f32 %v1285_v47, 0.0  ;;  %2889 = vmatpush3.bf16.msra.mxu0 %v2994_v25 }
 0x318   : > { %v1341_v53 = vmax.f32 %v1277_v49, 0.0 }
 0x319   : > { %v1363_v54 = vpack.c.bf16 %v1343_v51, %v1342_v50 }
 0x31a   : > { %v1362_v55 = vpack.c.bf16 %v1341_v53, %v1340_v52  ;;  %v2806_v56 = vpop.f32.mrb[56].mxu1 }
 0x31b   : > { %v1298_v57 = vadd.f32 %v2806_v56, %v3599_v35  ;;  %v1289_v58 = vpop.f32.mrb[57].mxu1 }
 0x31c   : > { %v1290_v59 = vadd.f32 %v3599_v35, %v1289_v58  ;;  %v2807_v60 = vpop.f32.mrb[58].mxu1  ;;  %2834 = vmatprep.mubr.msk.bf16.mxu0 %vm1383_vm2, %v1362_v55 }
 0x31d   : > { %v1301_v62 = vadd.f32 %v2807_v60, %v3599_v35  ;;  %v1292_v63 = vpop.f32.mrb[59].mxu1  ;;  %2835 = vmatmul.mubr.msk.bf16.gmra.mrb[52].mxu0 %vm1383_vm2, %v1363_v54  ;;  %v1346_v1 = vmax.f32 %v1298_v57, 0.0 }
 0x31e   : > { %v1293_v0 = vadd.f32 %v3599_v35, %v1292_v63  ;;  %v1344_v3 = vmax.f32 %v1290_v59, 0.0 }
 0x31f   : > { %v1347_v2 = vmax.f32 %v1301_v62, 0.0 }
 0x320   : > { %v1345_v4 = vmax.f32 %v1293_v0, 0.0 }
 0x321   : > { %v1365_v5 = vpack.c.bf16 %v1347_v2, %v1346_v1 }
 0x322   : > { %v1364_v6 = vpack.c.bf16 %v1345_v4, %v1344_v3  ;;  %v2810_v7 = vpop.f32.mrb[60].mxu1 }
 0x323   : > { %v1314_v8 = vadd.f32 %v2810_v7, %v3599_v35  ;;  %v1305_v9 = vpop.f32.mrb[61].mxu1 }
 0x324   : > { %v1306_v10 = vadd.f32 %v3599_v35, %v1305_v9  ;;  %v2811_v11 = vpop.f32.mrb[62].mxu1  ;;  %2838 = vmatprep.mubr.msk.bf16.mxu0 %vm1383_vm2, %v1364_v6 }
 0x325   : > { %v1317_v12 = vadd.f32 %v2811_v11, %v3599_v35  ;;  %v1308_v13 = vpop.f32.mrb[63].mxu1  ;;  %2839 = vmatmul.mubr.msk.bf16.gmra.mrb[56].mxu0 %vm1383_vm2, %v1365_v5  ;;  %v1350_v15 = vmax.f32 %v1314_v8, 0.0 }
 0x326   : > { %v1309_v14 = vadd.f32 %v3599_v35, %v1308_v13  ;;  %v1348_v17 = vmax.f32 %v1306_v10, 0.0  ;;  %v2990_v35 = vld [vmem:[%s3906_s9 + $0x8] sm:$0xff]  }
 0x327   : > { %v1351_v16 = vmax.f32 %v1317_v12, 0.0 }
 0x328   : > { %v1349_v18 = vmax.f32 %v1309_v14, 0.0 }
 0x329   : > { %v1367_v19 = vpack.c.bf16 %v1351_v16, %v1350_v15 }
 0x32a   : > { %v1366_v20 = vpack.c.bf16 %v1349_v18, %v1348_v17 }
 0x32c   : > { %2842 = vmatprep.mubr.msk.bf16.mxu1 %vm1383_vm2, %v1366_v20 }
 0x32d   : > { %2843 = vmatmul.mubr.msk.bf16.vlgmr.msra.gmra.mrb[64].mxu1 %vm1383_vm2, %v1367_v19 }
 0x32e   : > { %2847 = vmatpush3.bf16.msra.mxu1 %v2989_v21 }
 0x32f   : > { %2848 = vmatprep.subr.bf16.mxu1 %v2990_v35 }
 0x332   : > { %2849 = vmatpush3.bf16.msra.mxu1 %v2990_v35 }
 0x3c8   : > { %v2816_v27 = vpop.f32.mrb[32].mxu0 }
 0x3c9   : > { %v1475_v28 = vadd.f32 %v2816_v27, %v3670_v26  ;;  %v1466_v29 = vpop.f32.mrb[33].mxu0 }
 0x3ca   : > { %v1467_v30 = vadd.f32 %v3670_v26, %v1466_v29  ;;  %v2817_v31 = vpop.f32.mrb[34].mxu0 }
 0x3cb   : > { %v1478_v32 = vadd.f32 %v2817_v31, %v3670_v26  ;;  %v1469_v33 = vpop.f32.mrb[35].mxu0  ;;  %v1595_v36 = vmax.f32 %v1475_v28, 0.0 }
 0x3cc   : > { %v1470_v34 = vadd.f32 %v3670_v26, %v1469_v33  ;;  %v1593_v38 = vmax.f32 %v1467_v30, 0.0 }
 0x3cd   : > { %v1596_v37 = vmax.f32 %v1478_v32, 0.0 }
 0x3ce   : > { %v1594_v61 = vmax.f32 %v1470_v34, 0.0 }
 0x3cf   : > { %v1626_v39 = vpack.c.bf16 %v1596_v37, %v1595_v36 }
 0x3d0   : > { %v1625_v40 = vpack.c.bf16 %v1594_v61, %v1593_v38  ;;  %v2820_v41 = vpop.f32.mrb[36].mxu0 }
 0x3d1   : > { %v1491_v42 = vadd.f32 %v2820_v41, %v3670_v26  ;;  %v1482_v43 = vpop.f32.mrb[37].mxu0 }
 0x3d2   : > { %v1483_v44 = vadd.f32 %v3670_v26, %v1482_v43  ;;  %v2821_v45 = vpop.f32.mrb[38].mxu0  ;;  %2850 = vmatprep.mubr.msk.bf16.mxu1 %vm1110_vm1, %v1625_v40 }
 0x3d3   : > { %v1494_v46 = vadd.f32 %v2821_v45, %v3670_v26  ;;  %v1485_v47 = vpop.f32.mrb[39].mxu0  ;;  %2851 = vmatmul.mubr.msk.bf16.vlgmr.msra.gmra.mrb[68].mxu1 %vm1110_vm1, %v1626_v39  ;;  %v1599_v49 = vmax.f32 %v1491_v42, 0.0 }
 0x3d4   : > { %v1486_v48 = vadd.f32 %v3670_v26, %v1485_v47  ;;  %v1597_v51 = vmax.f32 %v1483_v44, 0.0 }
 0x3d5   : > { %v1600_v50 = vmax.f32 %v1494_v46, 0.0 }
 0x3d6   : > { %v1598_v52 = vmax.f32 %v1486_v48, 0.0 }
 0x3d7   : > { %v1628_v53 = vpack.c.bf16 %v1600_v50, %v1599_v49 }
 0x3d8   : > { %v1627_v54 = vpack.c.bf16 %v1598_v52, %v1597_v51  ;;  %v2824_v55 = vpop.f32.mrb[40].mxu0 }
 0x3d9   : > { %v1507_v56 = vadd.f32 %v2824_v55, %v3670_v26  ;;  %v1498_v57 = vpop.f32.mrb[41].mxu0 }
 0x3da   : > { %v1499_v58 = vadd.f32 %v3670_v26, %v1498_v57  ;;  %v2825_v59 = vpop.f32.mrb[42].mxu0  ;;  %2854 = vmatprep.mubr.msk.bf16.mxu1 %vm1110_vm1, %v1627_v54 }
 0x3db   : > { %v1510_v60 = vadd.f32 %v2825_v59, %v3670_v26  ;;  %v1501_v62 = vpop.f32.mrb[43].mxu0  ;;  %2855 = vmatmul.mubr.msk.bf16.gmra.mrb[72].mxu1 %vm1110_vm1, %v1628_v53  ;;  %v1603_v0 = vmax.f32 %v1507_v56, 0.0 }
 0x3dc   : > { %v1502_v63 = vadd.f32 %v3670_v26, %v1501_v62  ;;  %v1601_v2 = vmax.f32 %v1499_v58, 0.0 }
 0x3dd   : > { %v1604_v1 = vmax.f32 %v1510_v60, 0.0 }
 0x3de   : > { %v1602_v3 = vmax.f32 %v1502_v63, 0.0 }
 0x3df   : > { %v1630_v4 = vpack.c.bf16 %v1604_v1, %v1603_v0 }
 0x3e0   : > { %v1629_v5 = vpack.c.bf16 %v1602_v3, %v1601_v2  ;;  %v2828_v6 = vpop.f32.mrb[44].mxu0 }
 0x3e1   : > { %v1523_v7 = vadd.f32 %v2828_v6, %v3670_v26  ;;  %v1514_v8 = vpop.f32.mrb[45].mxu0 }
 0x3e2   : > { %v1515_v9 = vadd.f32 %v3670_v26, %v1514_v8  ;;  %v2829_v10 = vpop.f32.mrb[46].mxu0  ;;  %2858 = vmatprep.mubr.msk.bf16.mxu1 %vm1110_vm1, %v1629_v5 }
 0x3e3   : > { %v1526_v11 = vadd.f32 %v2829_v10, %v3670_v26  ;;  %v1517_v12 = vpop.f32.mrb[47].mxu0  ;;  %2859 = vmatmul.mubr.msk.bf16.gmra.mrb[76].mxu1 %vm1110_vm1, %v1630_v4  ;;  %v1607_v14 = vmax.f32 %v1523_v7, 0.0 }
 0x3e4   : > { %v1518_v13 = vadd.f32 %v3670_v26, %v1517_v12  ;;  %v1605_v16 = vmax.f32 %v1515_v9, 0.0 }
 0x3e5   : > { %v1608_v15 = vmax.f32 %v1526_v11, 0.0 }
 0x3e6   : > { %v1606_v17 = vmax.f32 %v1518_v13, 0.0  ;;  %v3723_v13 = vld [vmem:[%s3907_s10] ss:$0 sm:$0xff] }
 0x3e7   : > { %v1632_v18 = vpack.c.bf16 %v1608_v15, %v1607_v14 }
 0x3e8   : > { %v1631_v19 = vpack.c.bf16 %v1606_v17, %v1605_v16  ;;  %v2832_v20 = vpop.f32.mrb[48].mxu0 }
 0x3e9   : > { %v1539_v21 = vadd.f32 %v2832_v20, %v3670_v26  ;;  %v1530_v35 = vpop.f32.mrb[49].mxu0 }
 0x3ea   : > { %v1531_v22 = vadd.f32 %v3670_v26, %v1530_v35  ;;  %v2833_v23 = vpop.f32.mrb[50].mxu0  ;;  %2862 = vmatprep.mubr.msk.bf16.mxu1 %vm1110_vm1, %v1631_v19 }
 0x3eb   : > { %v1542_v24 = vadd.f32 %v2833_v23, %v3670_v26  ;;  %v1533_v25 = vpop.f32.mrb[51].mxu0  ;;  %2863 = vmatmul.mubr.msk.bf16.gmra.mrb[80].mxu1 %vm1110_vm1, %v1632_v18  ;;  %v1611_v28 = vmax.f32 %v1539_v21, 0.0 }
 0x3ec   : > { %v1534_v27 = vadd.f32 %v3670_v26, %v1533_v25  ;;  %v1609_v30 = vmax.f32 %v1531_v22, 0.0 }
 0x3ed   : > { %v1612_v29 = vmax.f32 %v1542_v24, 0.0 }
 0x3ee   : > { %v1610_v31 = vmax.f32 %v1534_v27, 0.0 }
 0x3ef   : > { %v1634_v32 = vpack.c.bf16 %v1612_v29, %v1611_v28 }
 0x3f0   : > { %v1633_v33 = vpack.c.bf16 %v1610_v31, %v1609_v30  ;;  %v2836_v34 = vpop.f32.mrb[52].mxu0 }
 0x3f1   : > { %v1555_v36 = vadd.f32 %v2836_v34, %v3670_v26  ;;  %v1546_v37 = vpop.f32.mrb[53].mxu0 }
 0x3f2   : > { %v1547_v38 = vadd.f32 %v3670_v26, %v1546_v37  ;;  %v2837_v61 = vpop.f32.mrb[54].mxu0  ;;  %2866 = vmatprep.mubr.msk.bf16.mxu1 %vm1110_vm1, %v1633_v33 }
 0x3f3   : > { %v1558_v39 = vadd.f32 %v2837_v61, %v3670_v26  ;;  %v1549_v40 = vpop.f32.mrb[55].mxu0  ;;  %2867 = vmatmul.mubr.msk.bf16.gmra.mrb[84].mxu1 %vm1110_vm1, %v1634_v32  ;;  %v1615_v42 = vmax.f32 %v1555_v36, 0.0 }
 0x3f4   : > { %v1550_v41 = vadd.f32 %v3670_v26, %v1549_v40  ;;  %v1613_v44 = vmax.f32 %v1547_v38, 0.0 }
 0x3f5   : > { %v1616_v43 = vmax.f32 %v1558_v39, 0.0 }
 0x3f6   : > { %v1614_v45 = vmax.f32 %v1550_v41, 0.0 }
 0x3f7   : > { %v1636_v46 = vpack.c.bf16 %v1616_v43, %v1615_v42 }
 0x3f8   : > { %v1635_v47 = vpack.c.bf16 %v1614_v45, %v1613_v44  ;;  %v2840_v48 = vpop.f32.mrb[56].mxu0 }
 0x3f9   : > { %v1571_v49 = vadd.f32 %v2840_v48, %v3670_v26  ;;  %v1562_v50 = vpop.f32.mrb[57].mxu0 }
 0x3fa   : > { %v1563_v51 = vadd.f32 %v3670_v26, %v1562_v50  ;;  %v2841_v52 = vpop.f32.mrb[58].mxu0  ;;  %2870 = vmatprep.mubr.msk.bf16.mxu1 %vm1110_vm1, %v1635_v47 }
 0x3fb   : > { %v1574_v53 = vadd.f32 %v2841_v52, %v3670_v26  ;;  %v1565_v54 = vpop.f32.mrb[59].mxu0  ;;  %2871 = vmatmul.mubr.msk.bf16.gmra.mrb[88].mxu1 %vm1110_vm1, %v1636_v46  ;;  %v1619_v56 = vmax.f32 %v1571_v49, 0.0 }
 0x3fc   : > { %v1566_v55 = vadd.f32 %v3670_v26, %v1565_v54  ;;  %v1617_v58 = vmax.f32 %v1563_v51, 0.0 }
 0x3fd   : > { %v1620_v57 = vmax.f32 %v1574_v53, 0.0 }
 0x3fe   : > { %v1618_v59 = vmax.f32 %v1566_v55, 0.0 }
 0x3ff   : > { %v1638_v60 = vpack.c.bf16 %v1620_v57, %v1619_v56 }
 0x400   : > { %v1637_v62 = vpack.c.bf16 %v1618_v59, %v1617_v58  ;;  %v2844_v63 = vpop.f32.mrb[64].mxu1 }
 0x401   : > { %v1587_v0 = vadd.f32 %v2844_v63, %v3670_v26  ;;  %v1578_v1 = vpop.f32.mrb[65].mxu1 }
 0x402   : > { %v1579_v2 = vadd.f32 %v3670_v26, %v1578_v1  ;;  %v2845_v3 = vpop.f32.mrb[66].mxu1  ;;  %2874 = vmatprep.mubr.msk.bf16.mxu1 %vm1110_vm1, %v1637_v62 }
 0x403   : > { %v1590_v4 = vadd.f32 %v2845_v3, %v3670_v26  ;;  %v1581_v5 = vpop.f32.mrb[67].mxu1  ;;  %2875 = vmatmul.mubr.msk.bf16.gmra.mrb[92].mxu1 %vm1110_vm1, %v1638_v60  ;;  %v1623_v7 = vmax.f32 %v1587_v0, 0.0 }
 0x404   : > { %v1582_v6 = vadd.f32 %v3670_v26, %v1581_v5  ;;  %v1621_v9 = vmax.f32 %v1579_v2, 0.0 }
 0x405   : > { %v1624_v8 = vmax.f32 %v1590_v4, 0.0 }
 0x406   : > { %v1622_v10 = vmax.f32 %v1582_v6, 0.0 }
 0x407   : > { %v1640_v11 = vpack.c.bf16 %v1624_v8, %v1623_v7 }
 0x408   : > { %v1639_v12 = vpack.c.bf16 %v1622_v10, %v1621_v9 }
 0x40a   : > { %2878 = vmatprep.mubr.msk.bf16.mxu1 %vm1110_vm1, %v1639_v12 }
 0x40b   : > { %2879 = vmatmul.mubr.msk.bf16.gmra.mrb[96].mxu1 %vm1110_vm1, %v1640_v11 }
 0x4a6   : > { %v2852_v14 = vpop.f32.mrb[68].mxu1 }
 0x4a7   : > { %v1755_v15 = vadd.f32 %v2852_v14, %v3723_v13  ;;  %v1746_v16 = vpop.f32.mrb[69].mxu1 }
 0x4a8   : > { %v1747_v26 = vadd.f32 %v3723_v13, %v1746_v16  ;;  %v2853_v17 = vpop.f32.mrb[70].mxu1 }
 0x4a9   : > { %v1758_v18 = vadd.f32 %v2853_v17, %v3723_v13  ;;  %v1749_v19 = vpop.f32.mrb[71].mxu1  ;;  %v1875_v21 = vmax.f32 %v1755_v15, 0.0 }
 0x4aa   : > { %v1750_v20 = vadd.f32 %v3723_v13, %v1749_v19  ;;  %v1873_v22 = vmax.f32 %v1747_v26, 0.0 }
 0x4ab   : > { %v1876_v35 = vmax.f32 %v1758_v18, 0.0 }
 0x4ac   : > { %v1874_v23 = vmax.f32 %v1750_v20, 0.0 }
 0x4ad   : > { %v1906_v24 = vpack.c.bf16 %v1876_v35, %v1875_v21 }
 0x4ae   : > { %v1905_v25 = vpack.c.bf16 %v1874_v23, %v1873_v22  ;;  %v2856_v27 = vpop.f32.mrb[72].mxu1 }
 0x4af   : > { %v1771_v28 = vadd.f32 %v2856_v27, %v3723_v13  ;;  %v1762_v29 = vpop.f32.mrb[73].mxu1 }
 0x4b0   : > { %v1763_v30 = vadd.f32 %v3723_v13, %v1762_v29  ;;  %v2857_v31 = vpop.f32.mrb[74].mxu1  ;;  %2890 = vmatprep.mubr.msk.bf16.mxu0 %vm829_vm0, %v1905_v25 }
 0x4b1   : > { %v1774_v32 = vadd.f32 %v2857_v31, %v3723_v13  ;;  %v1765_v33 = vpop.f32.mrb[75].mxu1  ;;  %2891 = vmatmul.mubr.msk.bf16.vlgmr.msra.gmra.mrb[60].mxu0 %vm829_vm0, %v1906_v24  ;;  %v1879_v36 = vmax.f32 %v1771_v28, 0.0 }
 0x4b2   : > { %v1766_v34 = vadd.f32 %v3723_v13, %v1765_v33  ;;  %v1877_v38 = vmax.f32 %v1763_v30, 0.0 }
 0x4b3   : > { %v1880_v37 = vmax.f32 %v1774_v32, 0.0 }
 0x4b4   : > { %v1878_v61 = vmax.f32 %v1766_v34, 0.0 }
 0x4b5   : > { %v1908_v39 = vpack.c.bf16 %v1880_v37, %v1879_v36 }
 0x4b6   : > { %v1907_v40 = vpack.c.bf16 %v1878_v61, %v1877_v38  ;;  %v2860_v41 = vpop.f32.mrb[76].mxu1 }
 0x4b7   : > { %v1787_v42 = vadd.f32 %v2860_v41, %v3723_v13  ;;  %v1778_v43 = vpop.f32.mrb[77].mxu1 }
 0x4b8   : > { %v1779_v44 = vadd.f32 %v3723_v13, %v1778_v43  ;;  %v2861_v45 = vpop.f32.mrb[78].mxu1  ;;  %2894 = vmatprep.mubr.msk.bf16.mxu0 %vm829_vm0, %v1907_v40 }
 0x4b9   : > { %v1790_v46 = vadd.f32 %v2861_v45, %v3723_v13  ;;  %v1781_v47 = vpop.f32.mrb[79].mxu1  ;;  %2895 = vmatmul.mubr.msk.bf16.gmra.mrb[64].mxu0 %vm829_vm0, %v1908_v39  ;;  %v1883_v49 = vmax.f32 %v1787_v42, 0.0 }
 0x4ba   : > { %v1782_v48 = vadd.f32 %v3723_v13, %v1781_v47  ;;  %v1881_v51 = vmax.f32 %v1779_v44, 0.0 }
 0x4bb   : > { %v1884_v50 = vmax.f32 %v1790_v46, 0.0 }
 0x4bc   : > { %v1882_v52 = vmax.f32 %v1782_v48, 0.0 }
 0x4bd   : > { %v1910_v53 = vpack.c.bf16 %v1884_v50, %v1883_v49 }
 0x4be   : > { %v1909_v54 = vpack.c.bf16 %v1882_v52, %v1881_v51  ;;  %v2864_v55 = vpop.f32.mrb[80].mxu1 }
 0x4bf   : > { %v1803_v56 = vadd.f32 %v2864_v55, %v3723_v13  ;;  %v1794_v57 = vpop.f32.mrb[81].mxu1 }
 0x4c0   : > { %v1795_v58 = vadd.f32 %v3723_v13, %v1794_v57  ;;  %v2865_v59 = vpop.f32.mrb[82].mxu1  ;;  %2898 = vmatprep.mubr.msk.bf16.mxu0 %vm829_vm0, %v1909_v54 }
 0x4c1   : > { %v1806_v60 = vadd.f32 %v2865_v59, %v3723_v13  ;;  %v1797_v62 = vpop.f32.mrb[83].mxu1  ;;  %2899 = vmatmul.mubr.msk.bf16.gmra.mrb[68].mxu0 %vm829_vm0, %v1910_v53  ;;  %v1887_v0 = vmax.f32 %v1803_v56, 0.0 }
 0x4c2   : > { %v1798_v63 = vadd.f32 %v3723_v13, %v1797_v62  ;;  %v1885_v2 = vmax.f32 %v1795_v58, 0.0 }
 0x4c3   : > { %v1888_v1 = vmax.f32 %v1806_v60, 0.0 }
 0x4c4   : > { %v1886_v3 = vmax.f32 %v1798_v63, 0.0  ;;  %v3776_v63 = vld [vmem:[%s3909_s12] ss:$0 sm:$0xff] }
 0x4c5   : > { %v1912_v4 = vpack.c.bf16 %v1888_v1, %v1887_v0 }
 0x4c6   : > { %v1911_v5 = vpack.c.bf16 %v1886_v3, %v1885_v2  ;;  %v2868_v6 = vpop.f32.mrb[84].mxu1 }
 0x4c7   : > { %v1819_v7 = vadd.f32 %v2868_v6, %v3723_v13  ;;  %v1810_v8 = vpop.f32.mrb[85].mxu1 }
 0x4c8   : > { %v1811_v9 = vadd.f32 %v3723_v13, %v1810_v8  ;;  %v2869_v10 = vpop.f32.mrb[86].mxu1  ;;  %2902 = vmatprep.mubr.msk.bf16.mxu0 %vm829_vm0, %v1911_v5 }
 0x4c9   : > { %v1822_v11 = vadd.f32 %v2869_v10, %v3723_v13  ;;  %v1813_v12 = vpop.f32.mrb[87].mxu1  ;;  %2903 = vmatmul.mubr.msk.bf16.gmra.mrb[72].mxu0 %vm829_vm0, %v1912_v4  ;;  %v1891_v15 = vmax.f32 %v1819_v7, 0.0 }
 0x4ca   : > { %v1814_v14 = vadd.f32 %v3723_v13, %v1813_v12  ;;  %v1889_v26 = vmax.f32 %v1811_v9, 0.0 }
 0x4cb   : > { %v1892_v16 = vmax.f32 %v1822_v11, 0.0 }
 0x4cc   : > { %v1890_v17 = vmax.f32 %v1814_v14, 0.0 }
 0x4cd   : > { %v1914_v18 = vpack.c.bf16 %v1892_v16, %v1891_v15 }
 0x4ce   : > { %v1913_v19 = vpack.c.bf16 %v1890_v17, %v1889_v26  ;;  %v2872_v20 = vpop.f32.mrb[88].mxu1 }
 0x4cf   : > { %v1835_v21 = vadd.f32 %v2872_v20, %v3723_v13  ;;  %v1826_v35 = vpop.f32.mrb[89].mxu1 }
 0x4d0   : > { %v1827_v22 = vadd.f32 %v3723_v13, %v1826_v35  ;;  %v2873_v23 = vpop.f32.mrb[90].mxu1  ;;  %2906 = vmatprep.mubr.msk.bf16.mxu0 %vm829_vm0, %v1913_v19 }
 0x4d1   : > { %v1838_v24 = vadd.f32 %v2873_v23, %v3723_v13  ;;  %v1829_v25 = vpop.f32.mrb[91].mxu1  ;;  %2907 = vmatmul.mubr.msk.bf16.gmra.mrb[76].mxu0 %vm829_vm0, %v1914_v18  ;;  %v1895_v28 = vmax.f32 %v1835_v21, 0.0 }
 0x4d2   : > { %v1830_v27 = vadd.f32 %v3723_v13, %v1829_v25  ;;  %v1893_v30 = vmax.f32 %v1827_v22, 0.0 }
 0x4d3   : > { %v1896_v29 = vmax.f32 %v1838_v24, 0.0 }
 0x4d4   : > { %v1894_v31 = vmax.f32 %v1830_v27, 0.0 }
 0x4d5   : > { %v1916_v32 = vpack.c.bf16 %v1896_v29, %v1895_v28 }
 0x4d6   : > { %v1915_v33 = vpack.c.bf16 %v1894_v31, %v1893_v30  ;;  %v2876_v34 = vpop.f32.mrb[92].mxu1 }
 0x4d7   : > { %v1851_v36 = vadd.f32 %v2876_v34, %v3723_v13  ;;  %v1842_v37 = vpop.f32.mrb[93].mxu1 }
 0x4d8   : > { %v1843_v38 = vadd.f32 %v3723_v13, %v1842_v37  ;;  %v2877_v61 = vpop.f32.mrb[94].mxu1  ;;  %2910 = vmatprep.mubr.msk.bf16.mxu0 %vm829_vm0, %v1915_v33 }
 0x4d9   : > { %v1854_v39 = vadd.f32 %v2877_v61, %v3723_v13  ;;  %v1845_v40 = vpop.f32.mrb[95].mxu1  ;;  %2911 = vmatmul.mubr.msk.bf16.gmra.mrb[80].mxu0 %vm829_vm0, %v1916_v32  ;;  %v1899_v42 = vmax.f32 %v1851_v36, 0.0 }
 0x4da   : > { %v1846_v41 = vadd.f32 %v3723_v13, %v1845_v40  ;;  %v1897_v44 = vmax.f32 %v1843_v38, 0.0 }
 0x4db   : > { %v1900_v43 = vmax.f32 %v1854_v39, 0.0 }
 0x4dc   : > { %v1898_v45 = vmax.f32 %v1846_v41, 0.0 }
 0x4dd   : > { %v1918_v46 = vpack.c.bf16 %v1900_v43, %v1899_v42 }
 0x4de   : > { %v1917_v47 = vpack.c.bf16 %v1898_v45, %v1897_v44  ;;  %v2880_v48 = vpop.f32.mrb[96].mxu1 }
 0x4df   : > { %v1867_v49 = vadd.f32 %v2880_v48, %v3723_v13  ;;  %v1858_v50 = vpop.f32.mrb[97].mxu1 }
 0x4e0   : > { %v1859_v51 = vadd.f32 %v3723_v13, %v1858_v50  ;;  %v2881_v52 = vpop.f32.mrb[98].mxu1  ;;  %2914 = vmatprep.mubr.msk.bf16.mxu0 %vm829_vm0, %v1917_v47 }
 0x4e1   : > { %v1870_v53 = vadd.f32 %v2881_v52, %v3723_v13  ;;  %v1861_v54 = vpop.f32.mrb[99].mxu1  ;;  %2915 = vmatmul.mubr.msk.bf16.gmra.mrb[84].mxu0 %vm829_vm0, %v1918_v46  ;;  %v1903_v56 = vmax.f32 %v1867_v49, 0.0 }
 0x4e2   : > { %v1862_v55 = vadd.f32 %v3723_v13, %v1861_v54  ;;  %v1901_v58 = vmax.f32 %v1859_v51, 0.0 }
 0x4e3   : > { %v1904_v57 = vmax.f32 %v1870_v53, 0.0 }
 0x4e4   : > { %v1902_v59 = vmax.f32 %v1862_v55, 0.0 }
 0x4e5   : > { %v1920_v60 = vpack.c.bf16 %v1904_v57, %v1903_v56 }
 0x4e6   : > { %v1919_v62 = vpack.c.bf16 %v1902_v59, %v1901_v58 }
 0x4e8   : > { %2918 = vmatprep.mubr.msk.bf16.mxu0 %vm829_vm0, %v1919_v62 }
 0x4e9   : > { %2919 = vmatmul.mubr.msk.bf16.gmra.mrb[88].mxu0 %vm829_vm0, %v1920_v60 }
 0x584   : > { %v2892_v0 = vpop.f32.mrb[60].mxu0 }
 0x585   : > { %v2051_v1 = vadd.f32 %v2892_v0, %v3776_v63  ;;  %v2042_v2 = vpop.f32.mrb[61].mxu0 }
 0x586   : > { %v2043_v13 = vadd.f32 %v3776_v63, %v2042_v2  ;;  %v2893_v3 = vpop.f32.mrb[62].mxu0 }
 0x587   : > { %v2171_v4 = vsub.f32 0.0, %v2051_v1  ;;  %v2054_v5 = vadd.f32 %v2893_v3, %v3776_v63  ;;  %v2045_v6 = vpop.f32.mrb[63].mxu0 }
 0x588   : > { %v2169_v7 = vsub.f32 0.0, %v2043_v13  ;;  %v2046_v8 = vadd.f32 %v3776_v63, %v2045_v6 }
 0x589   : > { %v2205_v9 = vmul.f32 1.442695, %v2171_v4  ;;  %v2172_v10 = vsub.f32 0.0, %v2054_v5 }
 0x58a   : > { %v2201_v11 = vmul.f32 1.442695, %v2169_v7  ;;  %v2170_v12 = vsub.f32 0.0, %v2046_v8 }
 0x58b   : > { %2995 = vpow2.f32 %v2205_v9  ;;  %v2207_v14 = vmul.f32 1.442695, %v2172_v10 }
 0x58c   : > { %2997 = vpow2.f32 %v2201_v11  ;;  %v2203_v15 = vmul.f32 1.442695, %v2170_v12  ;;  %v2896_v16 = vpop.f32.mrb[64].mxu0 }
 0x58d   : > { %2999 = vpow2.f32 %v2207_v14  ;;  %v2067_v26 = vadd.f32 %v2896_v16, %v3776_v63  ;;  %v2058_v17 = vpop.f32.mrb[65].mxu0 }
 0x58e   : > { %3001 = vpow2.f32 %v2203_v15  ;;  %v2059_v18 = vadd.f32 %v3776_v63, %v2058_v17  ;;  %v2897_v19 = vpop.f32.mrb[66].mxu0 }
 0x58f   : > { %v2175_v20 = vsub.f32 0.0, %v2067_v26  ;;  %v2070_v21 = vadd.f32 %v2897_v19, %v3776_v63  ;;  %v2061_v35 = vpop.f32.mrb[67].mxu0 }
 0x590   : > { %v2173_v22 = vsub.f32 0.0, %v2059_v18  ;;  %v2062_v23 = vadd.f32 %v3776_v63, %v2061_v35 }
 0x591   : > { %v2213_v24 = vmul.f32 1.442695, %v2175_v20  ;;  %v2176_v25 = vsub.f32 0.0, %v2070_v21 }
 0x592   : > { %v2209_v27 = vmul.f32 1.442695, %v2173_v22  ;;  %v2174_v28 = vsub.f32 0.0, %v2062_v23 }
 0x593   : > { %3003 = vpow2.f32 %v2213_v24  ;;  %v2215_v29 = vmul.f32 1.442695, %v2176_v25 }
 0x594   : > { %3005 = vpow2.f32 %v2209_v27  ;;  %v2211_v30 = vmul.f32 1.442695, %v2174_v28  ;;  %v2900_v31 = vpop.f32.mrb[68].mxu0 }
 0x595   : > { %v2996_v32 = vpop.eup %2995  ;;  %3007 = vpow2.f32 %v2215_v29  ;;  %v2083_v33 = vadd.f32 %v2900_v31, %v3776_v63  ;;  %v2074_v34 = vpop.f32.mrb[69].mxu0 }
 0x596   : > { %v2998_v36 = vpop.eup %2997  ;;  %v2267_v37 = vadd.f32 1.0, %v2996_v32  ;;  %3009 = vpow2.f32 %v2211_v30  ;;  %v2075_v38 = vadd.f32 %v3776_v63, %v2074_v34  ;;  %v2901_v61 = vpop.f32.mrb[70].mxu0 }
 0x597   : > { %v3000_v39 = vpop.eup %2999  ;;  %v2265_v40 = vadd.f32 1.0, %v2998_v36  ;;  %v2179_v41 = vsub.f32 0.0, %v2083_v33  ;;  %v2086_v42 = vadd.f32 %v2901_v61, %v3776_v63  ;;  %v2077_v43 = vpop.f32.mrb[71].mxu0 }
 0x598   : > { %v3002_v44 = vpop.eup %3001  ;;  %3011 = vrcp.f32 %v2267_v37  ;;  %v2268_v45 = vadd.f32 1.0, %v3000_v39  ;;  %v2177_v46 = vsub.f32 0.0, %v2075_v38  ;;  %v2078_v47 = vadd.f32 %v3776_v63, %v2077_v43 }
 0x599   : > { %3013 = vrcp.f32 %v2265_v40  ;;  %v2266_v48 = vadd.f32 1.0, %v3002_v44  ;;  %v2221_v49 = vmul.f32 1.442695, %v2179_v41  ;;  %v2180_v50 = vsub.f32 0.0, %v2086_v42 }
 0x59a   : > { %3015 = vrcp.f32 %v2268_v45  ;;  %v2217_v51 = vmul.f32 1.442695, %v2177_v46  ;;  %v2178_v52 = vsub.f32 0.0, %v2078_v47 }
 0x59b   : > { %3017 = vrcp.f32 %v2266_v48  ;;  %v2223_v53 = vmul.f32 1.442695, %v2180_v50 }
 0x59c   : > { %3019 = vpow2.f32 %v2221_v49  ;;  %v2219_v54 = vmul.f32 1.442695, %v2178_v52  ;;  %v2904_v55 = vpop.f32.mrb[72].mxu0 }
 0x59d   : > { %v3004_v56 = vpop.eup %3003  ;;  %3021 = vpow2.f32 %v2217_v51  ;;  %v2099_v57 = vadd.f32 %v2904_v55, %v3776_v63  ;;  %v2090_v58 = vpop.f32.mrb[73].mxu0 }
 0x59e   : > { %v3006_v59 = vpop.eup %3005  ;;  %v2271_v60 = vadd.f32 1.0, %v3004_v56  ;;  %3023 = vpow2.f32 %v2223_v53  ;;  %v2091_v62 = vadd.f32 %v3776_v63, %v2090_v58  ;;  %v2905_v0 = vpop.f32.mrb[74].mxu0 }
 0x59f   : > { %v3008_v1 = vpop.eup %3007  ;;  %v2269_v2 = vadd.f32 1.0, %v3006_v59  ;;  %3025 = vpow2.f32 %v2219_v54  ;;  %v2183_v13 = vsub.f32 0.0, %v2099_v57  ;;  %v2102_v3 = vadd.f32 %v2905_v0, %v3776_v63  ;;  %v2093_v4 = vpop.f32.mrb[75].mxu0 }
 0x5a0   : > { %v3010_v5 = vpop.eup %3009  ;;  %3027 = vrcp.f32 %v2271_v60  ;;  %v2272_v6 = vadd.f32 1.0, %v3008_v1  ;;  %v2181_v7 = vsub.f32 0.0, %v2091_v62  ;;  %v2094_v8 = vadd.f32 %v3776_v63, %v2093_v4 }
 0x5a1   : > { %3029 = vrcp.f32 %v2269_v2  ;;  %v2270_v9 = vadd.f32 1.0, %v3010_v5  ;;  %v2229_v10 = vmul.f32 1.442695, %v2183_v13  ;;  %v2184_v11 = vsub.f32 0.0, %v2102_v3 }
 0x5a2   : > { %v3012_v12 = vpop.eup %3011  ;;  %3031 = vrcp.f32 %v2272_v6  ;;  %v2225_v14 = vmul.f32 1.442695, %v2181_v7  ;;  %v2182_v15 = vsub.f32 0.0, %v2094_v8 }
 0x5a3   : > { %v3014_v16 = vpop.eup %3013  ;;  %2331 = vst [vmem:[%s3796_s19 + $0x10] sm:$0xff] %v3012_v12  ;;  %3033 = vrcp.f32 %v2270_v9  ;;  %v2231_v26 = vmul.f32 1.442695, %v2184_v11 }
 0x5a4   : > { %v3016_v17 = vpop.eup %3015  ;;  %2329 = vst [vmem:[%s3796_s19] sm:$0xff] %v3014_v16  ;;  %3035 = vpow2.f32 %v2229_v10  ;;  %v2227_v18 = vmul.f32 1.442695, %v2182_v15  ;;  %v2908_v19 = vpop.f32.mrb[76].mxu0 }
 0x5a5   : > { %v3018_v20 = vpop.eup %3017  ;;  %2332 = vst [vmem:[%s3796_s19 + $0x18] sm:$0xff] %v3016_v17  ;;  %3037 = vpow2.f32 %v2225_v14  ;;  %v2115_v21 = vadd.f32 %v2908_v19, %v3776_v63  ;;  %v2106_v35 = vpop.f32.mrb[77].mxu0 }
 0x5a6   : > { %v3020_v22 = vpop.eup %3019  ;;  %2330 = vst [vmem:[%s3796_s19 + $0x8] sm:$0xff] %v3018_v20  ;;  %3039 = vpow2.f32 %v2231_v26  ;;  %v2107_v23 = vadd.f32 %v3776_v63, %v2106_v35  ;;  %v2909_v24 = vpop.f32.mrb[78].mxu0 }
 0x5a7   : > { %v3022_v25 = vpop.eup %3021  ;;  %v2275_v27 = vadd.f32 1.0, %v3020_v22  ;;  %3041 = vpow2.f32 %v2227_v18  ;;  %v2187_v28 = vsub.f32 0.0, %v2115_v21  ;;  %v2118_v29 = vadd.f32 %v2909_v24, %v3776_v63  ;;  %v2109_v30 = vpop.f32.mrb[79].mxu0 }
 0x5a8   : > { %v3024_v31 = vpop.eup %3023  ;;  %v2273_v32 = vadd.f32 1.0, %v3022_v25  ;;  %v2185_v33 = vsub.f32 0.0, %v2107_v23  ;;  %v2110_v34 = vadd.f32 %v3776_v63, %v2109_v30 }
 0x5a9   : > { %v3026_v36 = vpop.eup %3025  ;;  %3043 = vrcp.f32 %v2275_v27  ;;  %v2276_v37 = vadd.f32 1.0, %v3024_v31  ;;  %v2237_v38 = vmul.f32 1.442695, %v2187_v28  ;;  %v2188_v61 = vsub.f32 0.0, %v2118_v29 }
 0x5aa   : > { %v3028_v39 = vpop.eup %3027  ;;  %3045 = vrcp.f32 %v2273_v32  ;;  %v2274_v40 = vadd.f32 1.0, %v3026_v36  ;;  %v2233_v41 = vmul.f32 1.442695, %v2185_v33  ;;  %v2186_v42 = vsub.f32 0.0, %v2110_v34 }
 0x5ab   : > { %v3030_v43 = vpop.eup %3029  ;;  %2335 = vst [vmem:[%s3796_s19 + $0x30] sm:$0xff] %v3028_v39  ;;  %3047 = vrcp.f32 %v2276_v37  ;;  %v2239_v44 = vmul.f32 1.442695, %v2188_v61 }
 0x5ac   : > { %v3032_v45 = vpop.eup %3031  ;;  %2333 = vst [vmem:[%s3796_s19 + $0x20] sm:$0xff] %v3030_v43  ;;  %3049 = vrcp.f32 %v2274_v40  ;;  %v2235_v46 = vmul.f32 1.442695, %v2186_v42  ;;  %v2912_v47 = vpop.f32.mrb[80].mxu0 }
 0x5ad   : > { %v3034_v48 = vpop.eup %3033  ;;  %2336 = vst [vmem:[%s3796_s19 + $0x38] sm:$0xff] %v3032_v45  ;;  %3051 = vpow2.f32 %v2237_v38  ;;  %v2131_v49 = vadd.f32 %v2912_v47, %v3776_v63  ;;  %v2122_v50 = vpop.f32.mrb[81].mxu0 }
 0x5ae   : > { %v3036_v51 = vpop.eup %3035  ;;  %2334 = vst [vmem:[%s3796_s19 + $0x28] sm:$0xff] %v3034_v48  ;;  %3053 = vpow2.f32 %v2233_v41  ;;  %v2123_v52 = vadd.f32 %v3776_v63, %v2122_v50  ;;  %v2913_v53 = vpop.f32.mrb[82].mxu0 }
 0x5af   : > { %v3038_v54 = vpop.eup %3037  ;;  %v2279_v55 = vadd.f32 1.0, %v3036_v51  ;;  %3055 = vpow2.f32 %v2239_v44  ;;  %v2191_v56 = vsub.f32 0.0, %v2131_v49  ;;  %v2134_v57 = vadd.f32 %v2913_v53, %v3776_v63  ;;  %v2125_v58 = vpop.f32.mrb[83].mxu0 }
 0x5b0   : > { %v3040_v59 = vpop.eup %3039  ;;  %v2277_v60 = vadd.f32 1.0, %v3038_v54  ;;  %3057 = vpow2.f32 %v2235_v46  ;;  %v2189_v62 = vsub.f32 0.0, %v2123_v52  ;;  %v2126_v0 = vadd.f32 %v3776_v63, %v2125_v58 }
 0x5b1   : > { %v3042_v1 = vpop.eup %3041  ;;  %3059 = vrcp.f32 %v2279_v55  ;;  %v2280_v2 = vadd.f32 1.0, %v3040_v59  ;;  %v2245_v13 = vmul.f32 1.442695, %v2191_v56  ;;  %v2192_v3 = vsub.f32 0.0, %v2134_v57 }
 0x5b2   : > { %3061 = vrcp.f32 %v2277_v60  ;;  %v2278_v4 = vadd.f32 1.0, %v3042_v1  ;;  %v2241_v5 = vmul.f32 1.442695, %v2189_v62  ;;  %v2190_v6 = vsub.f32 0.0, %v2126_v0 }
 0x5b3   : > { %v3044_v7 = vpop.eup %3043  ;;  %3063 = vrcp.f32 %v2280_v2  ;;  %v2247_v8 = vmul.f32 1.442695, %v2192_v3 }
 0x5b4   : > { %v3046_v9 = vpop.eup %3045  ;;  %2339 = vst [vmem:[%s3796_s19 + $0x50] sm:$0xff] %v3044_v7  ;;  %3065 = vrcp.f32 %v2278_v4  ;;  %v2243_v10 = vmul.f32 1.442695, %v2190_v6  ;;  %v2916_v11 = vpop.f32.mrb[84].mxu0 }
 0x5b5   : > { %v3048_v12 = vpop.eup %3047  ;;  %2337 = vst [vmem:[%s3796_s19 + $0x40] sm:$0xff] %v3046_v9  ;;  %3067 = vpow2.f32 %v2245_v13  ;;  %v2147_v14 = vadd.f32 %v2916_v11, %v3776_v63  ;;  %v2138_v15 = vpop.f32.mrb[85].mxu0 }
 0x5b6   : > { %v3050_v16 = vpop.eup %3049  ;;  %2340 = vst [vmem:[%s3796_s19 + $0x58] sm:$0xff] %v3048_v12  ;;  %3069 = vpow2.f32 %v2241_v5  ;;  %v2139_v26 = vadd.f32 %v3776_v63, %v2138_v15  ;;  %v2917_v17 = vpop.f32.mrb[86].mxu0 }
 0x5b7   : > { %v3052_v18 = vpop.eup %3051  ;;  %2338 = vst [vmem:[%s3796_s19 + $0x48] sm:$0xff] %v3050_v16  ;;  %3071 = vpow2.f32 %v2247_v8  ;;  %v2195_v19 = vsub.f32 0.0, %v2147_v14  ;;  %v2150_v20 = vadd.f32 %v2917_v17, %v3776_v63  ;;  %v2141_v21 = vpop.f32.mrb[87].mxu0 }
 0x5b8   : > { %v3054_v35 = vpop.eup %3053  ;;  %v2283_v22 = vadd.f32 1.0, %v3052_v18  ;;  %3073 = vpow2.f32 %v2243_v10  ;;  %v2193_v23 = vsub.f32 0.0, %v2139_v26  ;;  %v2142_v24 = vadd.f32 %v3776_v63, %v2141_v21 }
 0x5b9   : > { %v3056_v25 = vpop.eup %3055  ;;  %v2281_v27 = vadd.f32 1.0, %v3054_v35  ;;  %v2196_v28 = vsub.f32 0.0, %v2150_v20  ;;  %v2253_v31 = vmul.f32 1.442695, %v2195_v19 }
 0x5ba   : > { %v3058_v29 = vpop.eup %3057  ;;  %3075 = vrcp.f32 %v2283_v22  ;;  %v2284_v30 = vadd.f32 1.0, %v3056_v25  ;;  %v2194_v32 = vsub.f32 0.0, %v2142_v24  ;;  %v2249_v36 = vmul.f32 1.442695, %v2193_v23 }
 0x5bb   : > { %v3060_v33 = vpop.eup %3059  ;;  %3077 = vrcp.f32 %v2281_v27  ;;  %v2282_v34 = vadd.f32 1.0, %v3058_v29  ;;  %v2255_v38 = vmul.f32 1.442695, %v2196_v28 }
 0x5bc   : > { %v3062_v37 = vpop.eup %3061  ;;  %2343 = vst [vmem:[%s3796_s19 + $0x70] sm:$0xff] %v3060_v33  ;;  %3079 = vrcp.f32 %v2284_v30  ;;  %v2920_v61 = vpop.f32.mrb[88].mxu0  ;;  %v2251_v40 = vmul.f32 1.442695, %v2194_v32 }
 0x5bd   : > { %v3064_v39 = vpop.eup %3063  ;;  %2341 = vst [vmem:[%s3796_s19 + $0x60] sm:$0xff] %v3062_v37  ;;  %3081 = vrcp.f32 %v2282_v34  ;;  %v2163_v41 = vadd.f32 %v2920_v61, %v3776_v63  ;;  %v2154_v42 = vpop.f32.mrb[89].mxu0 }
 0x5be   : > { %v3066_v43 = vpop.eup %3065  ;;  %2344 = vst [vmem:[%s3796_s19 + $0x78] sm:$0xff] %v3064_v39  ;;  %3083 = vpow2.f32 %v2253_v31  ;;  %v2155_v44 = vadd.f32 %v3776_v63, %v2154_v42  ;;  %v2921_v45 = vpop.f32.mrb[90].mxu0 }
 0x5bf   : > { %v3068_v46 = vpop.eup %3067  ;;  %2342 = vst [vmem:[%s3796_s19 + $0x68] sm:$0xff] %v3066_v43  ;;  %3085 = vpow2.f32 %v2249_v36  ;;  %v2199_v47 = vsub.f32 0.0, %v2163_v41  ;;  %v2166_v48 = vadd.f32 %v2921_v45, %v3776_v63  ;;  %v2157_v49 = vpop.f32.mrb[91].mxu0 }
 0x5c0   : > { %v3070_v50 = vpop.eup %3069  ;;  %v2287_v51 = vadd.f32 1.0, %v3068_v46  ;;  %3087 = vpow2.f32 %v2255_v38  ;;  %v2197_v52 = vsub.f32 0.0, %v2155_v44  ;;  %v2158_v53 = vadd.f32 %v3776_v63, %v2157_v49 }
 0x5c1   : > { %v3072_v54 = vpop.eup %3071  ;;  %v2285_v55 = vadd.f32 1.0, %v3070_v50  ;;  %3089 = vpow2.f32 %v2251_v40  ;;  %v2200_v56 = vsub.f32 0.0, %v2166_v48  ;;  %v2261_v59 = vmul.f32 1.442695, %v2199_v47 }
 0x5c2   : > { %v3074_v57 = vpop.eup %3073  ;;  %3091 = vrcp.f32 %v2287_v51  ;;  %v2288_v58 = vadd.f32 1.0, %v3072_v54  ;;  %v2198_v60 = vsub.f32 0.0, %v2158_v53  ;;  %v2257_v0 = vmul.f32 1.442695, %v2197_v52 }
 0x5c3   : > { %3093 = vrcp.f32 %v2285_v55  ;;  %v2286_v62 = vadd.f32 1.0, %v3074_v57  ;;  %v2263_v2 = vmul.f32 1.442695, %v2200_v56 }
 0x5c4   : > { %v3076_v1 = vpop.eup %3075  ;;  %3095 = vrcp.f32 %v2288_v58  ;;  %v2259_v13 = vmul.f32 1.442695, %v2198_v60 }
 0x5c5   : > { %v3078_v63 = vpop.eup %3077  ;;  %2347 = vst [vmem:[%s3796_s19 + $0x90] sm:$0xff] %v3076_v1  ;;  %3097 = vrcp.f32 %v2286_v62 }
 0x5c6   : > { %v3080_v3 = vpop.eup %3079  ;;  %2345 = vst [vmem:[%s3796_s19 + $0x80] sm:$0xff] %v3078_v63  ;;  %3099 = vpow2.f32 %v2261_v59 }
 0x5c7   : > { %v3082_v4 = vpop.eup %3081  ;;  %2348 = vst [vmem:[%s3796_s19 + $0x98] sm:$0xff] %v3080_v3  ;;  %3101 = vpow2.f32 %v2257_v0 }
 0x5c8   : > { %v3084_v5 = vpop.eup %3083  ;;  %2346 = vst [vmem:[%s3796_s19 + $0x88] sm:$0xff] %v3082_v4  ;;  %3103 = vpow2.f32 %v2263_v2 }
 0x5c9   : > { %v3086_v6 = vpop.eup %3085  ;;  %v2291_v7 = vadd.f32 1.0, %v3084_v5  ;;  %3105 = vpow2.f32 %v2259_v13 }
 0x5ca   : > { %v3088_v8 = vpop.eup %3087  ;;  %v2289_v9 = vadd.f32 1.0, %v3086_v6 }
 0x5cb   : > { %v3090_v10 = vpop.eup %3089  ;;  %3107 = vrcp.f32 %v2291_v7  ;;  %v2292_v11 = vadd.f32 1.0, %v3088_v8 }
 0x5cc   : > { %v3092_v12 = vpop.eup %3091  ;;  %3109 = vrcp.f32 %v2289_v9  ;;  %v2290_v14 = vadd.f32 1.0, %v3090_v10 }
 0x5cd   : > { %v3094_v15 = vpop.eup %3093  ;;  %2351 = vst [vmem:[%s3796_s19 + $0xb0] sm:$0xff] %v3092_v12  ;;  %3111 = vrcp.f32 %v2292_v11 }
 0x5ce   : > { %v3096_v16 = vpop.eup %3095  ;;  %2349 = vst [vmem:[%s3796_s19 + $0xa0] sm:$0xff] %v3094_v15  ;;  %3113 = vrcp.f32 %v2290_v14 }
 0x5cf   : > { %v3098_v26 = vpop.eup %3097  ;;  %2352 = vst [vmem:[%s3796_s19 + $0xb8] sm:$0xff] %v3096_v16 }
 0x5d0   : > { %v3100_v17 = vpop.eup %3099  ;;  %2350 = vst [vmem:[%s3796_s19 + $0xa8] sm:$0xff] %v3098_v26 }
 0x5d1   : > { %v3102_v18 = vpop.eup %3101  ;;  %v2295_v19 = vadd.f32 1.0, %v3100_v17 }
 0x5d2   : > { %v3104_v20 = vpop.eup %3103  ;;  %v2293_v21 = vadd.f32 1.0, %v3102_v18 }
 0x5d3   : > { %v3106_v35 = vpop.eup %3105  ;;  %3115 = vrcp.f32 %v2295_v19  ;;  %v2296_v22 = vadd.f32 1.0, %v3104_v20 }
 0x5d4   : > { %3117 = vrcp.f32 %v2293_v21  ;;  %v2294_v23 = vadd.f32 1.0, %v3106_v35 }
 0x5d5   : > { %v3108_v24 = vpop.eup %3107  ;;  %3119 = vrcp.f32 %v2296_v22 }
 0x5d6   : > { %v3110_v25 = vpop.eup %3109  ;;  %2355 = vst [vmem:[%s3796_s19 + $0xd0] sm:$0xff] %v3108_v24  ;;  %3121 = vrcp.f32 %v2294_v23 }
 0x5d7   : > { %v3112_v27 = vpop.eup %3111  ;;  %2353 = vst [vmem:[%s3796_s19 + $0xc0] sm:$0xff] %v3110_v25 }
 0x5d8   : > { %v3114_v28 = vpop.eup %3113  ;;  %2356 = vst [vmem:[%s3796_s19 + $0xd8] sm:$0xff] %v3112_v27 }
 0x5d9   : > { %2354 = vst [vmem:[%s3796_s19 + $0xc8] sm:$0xff] %v3114_v28 }
 0x5dd   : > { %v3116_v29 = vpop.eup %3115 }
 0x5de   : > { %v3118_v30 = vpop.eup %3117  ;;  %2359 = vst [vmem:[%s3796_s19 + $0xf0] sm:$0xff] %v3116_v29 }
 0x5df   : > { %v3120_v31 = vpop.eup %3119  ;;  %2357 = vst [vmem:[%s3796_s19 + $0xe0] sm:$0xff] %v3118_v30 }
 0x5e0   : > { %v3122_v32 = vpop.eup %3121  ;;  %2360 = vst [vmem:[%s3796_s19 + $0xf8] sm:$0xff] %v3120_v31 }
 0x5e1   : > { %2358 = vst [vmem:[%s3796_s19 + $0xe8] sm:$0xff] %v3122_v32 }
 0x5e2   : > { %3166 = shalt.err (!%p3163_p2)
}
 0x5e3   : > { %s3167_s15 = scalar_lea.hbm %s3848_s25, 4096  ;;  %s3171_s18 = scalar_lea.hbm %s3910_s13, 8192 }
 0x5e4   : > { %p3168_p4 = scmp.ne.s32.totalorder %s3848_s25, %s3167_s15  ;;  %p3172_p9 = scmp.lt.u32.totalorder %s3848_s25, %s3910_s13 }
 0x5e5   : > { %p3173_p1 = scmp.lt.u32.totalorder %s3171_s18, %s3167_s15  ;;  %p3175_p6 = scmp.lt.u32.totalorder %s3167_s15, %s3848_s25 }
 0x5e6   : > { %p3169_p5 = pnand %p3168_p4, %p3925_p11 }
 0x5e7   : > { %p3174_p3 = por %p3173_p1, %p3172_p9 }
 0x5e8   : > { %p3170_p7 = pneg %p3169_p5 }
 0x5e9   : > { %p3176_p12 = por %p3175_p6, %p3174_p3 }
 0x5eb   : > { %p3177_p13 = pnand %p3176_p12, %p3170_p7 }
 0x5ed   : > { %3180 = shalt.err (!%p3177_p13)
}
 0x5ee   : > { %s3225_s27 = smov 128   ;;  %s3226_s17 = smov 8  }
 0x5ef   : > { %2926 = dma.vmem_to_hbm [thread:$0]  (%p3925_p11), %s3850_s24, 4096, %s3848_s25, %s2362_s29, %s3225_s27, %s3225_s27, %s3226_s17  }
 0x5f0 PF: > { %s3926_s16 = sld [smem:[#allocation8_spill]]  ;;  %p3927_p8 = scmp.ne.s32.totalorder %s3923_s21, 0 }
 0x5f1   : > { %p3928_p10 = scmp.ge.s32.totalorder %s3219_s28, 2 }
 0x5f3   : > { %p2933_p0 = pnand %p3928_p10, %p3927_p8 }
 0x5f6   : > { %s2390_s19 = sand.u32 1, %s3926_s16  }
 0x5f7   : > { %s2391_s15 = scalar_lea.sflag [#allocation4], %s2390_s19 }
 0x5f8   : > { %3202 = dma.done.wait (!%p2933_p0), %s2391_s15, 4096  }
 0x5f9   : > { %3204 = vsyncadd (!%p2933_p0), %s2391_s15, 4294963200  ;;  %s3929_s28 = sld [smem:[#allocation10_spill]]  ;;  %s3930_s22 = sld [smem:[#allocation9_spill]] }
 0x5fa   : > { %s3931_s27 = sld [smem:[#allocation11_spill]]  ;;  %s3932_s25 = smov %s3211_s26 }
 0x5ff   : > { %p26_p2 = scmp.ge.s32.totalorder %s3929_s28, 4   ;;  %s3933_s26 = smov %s3930_s22 }
 0x601   :  { %28 = sbr.rel (!%p26_p2) target bundleno = 5 (0x5), region = 117 }
 0x608   :  { %2396 = vsyncpa [#allocation3], 1 }
 0x609   :  { %2398 = vsyncpa [#allocation3 + $0x1], 1 }
 0x60a   :  { %2399 = vsyncpa [#allocation4], 1 }
 0x60b   :  { %2401 = vsyncpa [#allocation4 + $0x1], 1 }

</bundles_post_ra>
